<compile_context>
chip_gen: v6e
topology: v6e:2x2x1
jax: 0.10.0
libtpu: 0.0.40
codegen_flags: <defaults>
</compile_context>

<pallas_src>
import functools

import jax
import jax.numpy as jnp
from jax.experimental import pallas as pl
from jax.experimental.pallas import tpu as pltpu


def _round_up(v, m):
    return (v + m - 1) // m * m


def _leaky_relu(x, negative_slope=0.01):
    # Matches torch.nn.LeakyReLU() default (negative_slope=0.01).
    return jnp.where(x >= 0, x, negative_slope * x)


def _embedding_l2_kernel(x_ref,    # (TB, C*HW_pad) f32 input tile (only pipelined operand)
                         wbb_ref,  # (C, K1)  surrogate backbone projection, f32
                         w1_ref,   # (K1, E)  fc[0] (padded rows are zero), f32
                         b1_ref,   # (1, E)   fc[0] bias with backbone bias pre-folded
                         w2_ref,   # (E, E)   fc[2]
                         b2_ref,   # (1, E)
                         w3_ref,   # (E, E)   fc[4]
                         b3_ref,   # (1, E)
                         out_ref,  # (TB, E)  f32
                         *, C, HW, HW_pad):
    TB = x_ref.shape[0]
    K1 = wbb_ref.shape[1]
    inv_hw = jnp.float32(1.0 / HW)

    # --- surrogate backbone: per-channel global average pool + linear C -> K1,
    #     done as C scaled multiply-adds on the VPU (K=C is far too small for
    #     the MXU).  Backbone bias is folded into b1 on the host -> feat starts
    #     at zero.  Channel slices are 128-lane aligned (HW_pad % 128 == 0 or
    #     single full block), so no relayout copies; zero-padded lanes do not
    #     change the sum and inv_hw uses the true HW.
    feat = jnp.zeros((TB, K1), jnp.float32)
    for c in range(C):  # static; C is tiny (e.g. 3)
        x_c = x_ref[:, c * HW_pad:(c + 1) * HW_pad]                 # (TB, HW_pad)
        pooled_c = jnp.sum(x_c, axis=-1, keepdims=True) * inv_hw    # (TB, 1)
        feat = feat + pooled_c * wbb_ref[c:c + 1, :]

    # --- fc head: Linear(1000,256) -> LeakyReLU -> Linear(256,256)
    #              -> LeakyReLU -> Linear(256,256).  All f32 (matmul work is
    #     negligible next to the x HBM stream; keeps parity with the f32 ref).
    h = jnp.dot(feat, w1_ref[...], preferred_element_type=jnp.float32)
    h = _leaky_relu(h + b1_ref[...])
    h = jnp.dot(h, w2_ref[...], preferred_element_type=jnp.float32)
    h = _leaky_relu(h + b2_ref[...])
    h = jnp.dot(h, w3_ref[...], preferred_element_type=jnp.float32)
    h = h + b3_ref[...]

    # --- L2 normalization over dim 1 (no eps, matching
    #     `output /= output.pow(2).sum(1, keepdim=True).sqrt()`).  rsqrt -> EUP.
    inv_norm = jax.lax.rsqrt(jnp.sum(h * h, axis=1, keepdims=True))  # (TB, 1)
    out_ref[...] = (h * inv_norm).astype(out_ref.dtype)


def _vmem_limit_bytes():
    """Per-generation scoped-VMEM budget: 3/4 of physical, capped at 96 MiB.

    v5e/v6e (128 MiB physical) -> 96 MiB; v7x (64 MiB) -> 48 MiB.
    Falls back to the conservative 48 MiB if the query is unavailable.
    """
    phys = 64 << 20
    try:
        info = pltpu.get_tpu_info()
        phys = int(getattr(info, "vmem_capacity_bytes", phys))
    except Exception:
        pass
    return int(min((phys * 3) // 4, 96 << 20))


def embedding_net_l2(x, params):
    """x: (B, C, H, W) float32, NCHW. Returns (B, 256) L2-normalized embeddings."""
    B, C, H, W = x.shape
    HW = H * W
    K1 = params["wbb"].shape[1]
    E = params["w3"].shape[1]

    # Lane-align each channel's spatial block only if needed (zeros do not
    # change the pooled sum).  When HW is already 128-aligned (common case)
    # this is a free bitcast-reshape: no copy, no cast, no pad pass over x.
    HW_pad = _round_up(HW, 128)
    if HW_pad != HW:
        x_flat = jnp.pad(x.reshape(B, C, HW), ((0, 0), (0, 0), (0, HW_pad - HW)))
        x_flat = x_flat.reshape(B, C * HW_pad)
    else:
        x_flat = x.reshape(B, C * HW)
    CHW = C * HW_pad

    # --- VMEM-budgeted batch tile: x double-buffer + out double-buffer +
    #     f32 intermediates scale per row; resident weights (double-buffered)
    #     + compiler scratch are fixed.  TB is a multiple of 8, capped at 512.
    vmem_limit = _vmem_limit_bytes()
    weight_bytes = 4 * (C * K1 + K1 * E + 2 * E * E + 3 * E)
    fixed = 2 * weight_bytes + (4 << 20)
    per_row = 2 * 4 * CHW + 2 * 4 * E + 3 * 4 * K1 + 8 * 4 * E
    budget_tb = max(8, (vmem_limit - fixed) // per_row)
    if B <= 8:
        TB = B                                   # single block == full batch dim
    else:
        TB = max(8, (min(512, budget_tb, B) // 8) * 8)

    grid = (pl.cdiv(B, TB),)                     # partial trailing block handled by Pallas
    const2 = lambda i: (0, 0)                    # weights resident across grid steps

    in_specs = [
        pl.BlockSpec((TB, CHW), lambda i: (i, 0)),   # x: only pipelined operand
        pl.BlockSpec((C, K1), const2),               # wbb
        pl.BlockSpec((K1, E), const2),               # w1
        pl.BlockSpec((1, E), const2),                # b1 (backbone bias folded in)
        pl.BlockSpec((E, E), const2),                # w2
        pl.BlockSpec((1, E), const2),                # b2
        pl.BlockSpec((E, E), const2),                # w3
        pl.BlockSpec((1, E), const2),                # b3
    ]
    out_spec = pl.BlockSpec((TB, E), lambda i: (i, 0))

    kernel = functools.partial(_embedding_l2_kernel, C=C, HW=HW, HW_pad=HW_pad)

    return pl.pallas_call(
        kernel,
        out_shape=jax.ShapeDtypeStruct((B, E), jnp.float32),
        grid=grid,
        in_specs=in_specs,
        out_specs=out_spec,
        compiler_params=pltpu.CompilerParams(
            dimension_semantics=("parallel",),       # batch tiles across TCs (v7x)
            vmem_limit_bytes=vmem_limit),
    )(x_flat, params["wbb"], params["w1"], params["b1"],
      params["w2"], params["b2"], params["w3"], params["b3"])


def init_params(key, in_channels=3, feat_dim=1000, feat_pad=1024, emb=256):
    """Deterministic f32 params (shapes follow the module's __init__).

    Weights are stored (in_features, out_features); the 1000-wide backbone
    feature dim is zero-padded to 1024 (lane-aligned K for feat @ w1 — padded
    w1 rows are zero so the math is unchanged), and the surrogate-backbone
    bias is pre-folded into b1 (b1 += bbb @ w1), which is mathematically
    identical and removes per-step work from the kernel.
    """
    ks = jax.random.split(key, 8)

    def lin_w(kw, fan_in, fan_out):
        bound = 1.0 / jnp.sqrt(jnp.float32(fan_in))
        return jax.random.uniform(kw, (fan_in, fan_out), jnp.float32, -bound, bound)

    wbb = lin_w(ks[0], in_channels, feat_dim)            # surrogate backbone C -> 1000
    bbb = jax.random.uniform(ks[1], (1, feat_dim), jnp.float32, -0.1, 0.1)
    w1 = lin_w(ks[2], feat_dim, emb)
    b1 = jax.random.uniform(ks[3], (1, emb), jnp.float32, -0.03, 0.03)
    w2 = lin_w(ks[4], emb, emb)
    b2 = jax.random.uniform(ks[5], (1, emb), jnp.float32, -0.06, 0.06)
    w3 = lin_w(ks[6], emb, emb)
    b3 = jax.random.uniform(ks[7], (1, emb), jnp.float32, -0.06, 0.06)

    b1 = b1 + bbb @ w1                                   # fold backbone bias through fc[0]

    pad = feat_pad - feat_dim
    wbb = jnp.pad(wbb, ((0, 0), (0, pad)))
    w1 = jnp.pad(w1, ((0, pad), (0, 0)))

    return {"wbb": wbb, "w1": w1, "b1": b1, "w2": w2, "b2": b2, "w3": w3, "b3": b3}


def embedding_net_l2_reference(x, params):
    """Pure-JAX reference of the same surrogate + MLP head + L2 norm."""
    B, C, H, W = x.shape
    pooled = jnp.mean(x.reshape(B, C, H * W), axis=-1)    # (B, C)
    feat = pooled @ params["wbb"]                         # (B, K1); padded cols are zero
    h = _leaky_relu(feat @ params["w1"] + params["b1"])
    h = _leaky_relu(h @ params["w2"] + params["b2"])
    h = h @ params["w3"] + params["b3"]
    return h / jnp.sqrt(jnp.sum(h * h, axis=1, keepdims=True))


if __name__ == "__main__":
    key = jax.random.PRNGKey(0)
    k_x, k_p = jax.random.split(key)

    # Small NCHW input consistent with an image backbone: batch=2, 3 channels, 16x16.
    x = jax.random.normal(k_x, (2, 3, 16, 16), dtype=jnp.float32)
    params = init_params(k_p, in_channels=3)

    out = jax.block_until_ready(embedding_net_l2(x, params))
    assert out.shape == (2, 256), out.shape

    # Sanity: rows are unit L2 norm (norm computed in f32 in-kernel).
    norms = jnp.sqrt(jnp.sum(out ** 2, axis=1))
    assert bool(jnp.all(jnp.abs(norms - 1.0) < 1e-4)), norms

    # Cross-check against the pure-JAX reference (f32 everywhere; loose bound
    # covers MXU-vs-XLA f32 matmul pass differences).
    ref = embedding_net_l2_reference(x, params)
    max_err = jnp.max(jnp.abs(out - ref))
    assert bool(max_err < 2e-2), max_err

    print("KERNEL_OK")
</pallas_src>

<mosaic_0001>
module attributes {stable_mosaic.version = 11 : i64} {
  func.func @_embedding_l2_kernel(%arg0: i32, %arg1: memref<2x768xf32, #tpu.memory_space<vmem>>, %arg2: memref<3x1024xf32, #tpu.memory_space<vmem>>, %arg3: memref<1024x256xf32, #tpu.memory_space<vmem>>, %arg4: memref<1x256xf32, #tpu.memory_space<vmem>>, %arg5: memref<256x256xf32, #tpu.memory_space<vmem>>, %arg6: memref<1x256xf32, #tpu.memory_space<vmem>>, %arg7: memref<256x256xf32, #tpu.memory_space<vmem>>, %arg8: memref<1x256xf32, #tpu.memory_space<vmem>>, %arg9: memref<2x256xf32, #tpu.memory_space<vmem>>) attributes {dimension_semantics = [#tpu.dimension_semantics<parallel>], iteration_bounds = array<i64: 1>, scalar_prefetch = 0 : i64, scratch_operands = 0 : i64, tpu.core_type = #tpu.core_type<tc>, window_params = [{transform_indices = @transform_0, window_bounds = array<i64: 2, 768>}, {pipeline_mode = #tpu.pipeline_mode<synchronous>, transform_indices = @transform_1, window_bounds = array<i64: 3, 1024>}, {pipeline_mode = #tpu.pipeline_mode<synchronous>, transform_indices = @transform_2, window_bounds = array<i64: 1024, 256>}, {pipeline_mode = #tpu.pipeline_mode<synchronous>, transform_indices = @transform_3, window_bounds = array<i64: 1, 256>}, {pipeline_mode = #tpu.pipeline_mode<synchronous>, transform_indices = @transform_4, window_bounds = array<i64: 256, 256>}, {pipeline_mode = #tpu.pipeline_mode<synchronous>, transform_indices = @transform_5, window_bounds = array<i64: 1, 256>}, {pipeline_mode = #tpu.pipeline_mode<synchronous>, transform_indices = @transform_6, window_bounds = array<i64: 256, 256>}, {pipeline_mode = #tpu.pipeline_mode<synchronous>, transform_indices = @transform_7, window_bounds = array<i64: 1, 256>}, {transform_indices = @transform_8, window_bounds = array<i64: 2, 256>}]} {
    %cst = arith.constant 0.000000e+00 : f32
    %0 = vector.broadcast %cst : f32 to vector<2x1024xf32>
    %c0 = arith.constant 0 : index
    %c0_0 = arith.constant 0 : index
    %1 = vector.load %arg1[%c0, %c0_0] : memref<2x768xf32, #tpu.memory_space<vmem>>, vector<2x256xf32>
    %cst_1 = arith.constant dense<0.000000e+00> : vector<2xf32>
    %2 = vector.multi_reduction <add>, %1, %cst_1 [1] : vector<2x256xf32> to vector<2xf32>
    %3 = vector.shape_cast %2 : vector<2xf32> to vector<2x1xf32>
    %cst_2 = arith.constant 3.906250e-03 : f32
    %4 = vector.broadcast %cst_2 : f32 to vector<2x1xf32>
    %5 = arith.mulf %3, %4 : vector<2x1xf32>
    %c0_3 = arith.constant 0 : index
    %c0_4 = arith.constant 0 : index
    %6 = vector.load %arg2[%c0_3, %c0_4] : memref<3x1024xf32, #tpu.memory_space<vmem>>, vector<1x1024xf32>
    %7 = vector.broadcast %5 : vector<2x1xf32> to vector<2x1024xf32>
    %8 = vector.broadcast %6 : vector<1x1024xf32> to vector<2x1024xf32>
    %9 = arith.mulf %7, %8 : vector<2x1024xf32>
    %10 = arith.addf %0, %9 : vector<2x1024xf32>
    %c0_5 = arith.constant 0 : index
    %c256 = arith.constant 256 : index
    %11 = vector.load %arg1[%c0_5, %c256] : memref<2x768xf32, #tpu.memory_space<vmem>>, vector<2x256xf32>
    %cst_6 = arith.constant dense<0.000000e+00> : vector<2xf32>
    %12 = vector.multi_reduction <add>, %11, %cst_6 [1] : vector<2x256xf32> to vector<2xf32>
    %13 = vector.shape_cast %12 : vector<2xf32> to vector<2x1xf32>
    %cst_7 = arith.constant 3.906250e-03 : f32
    %14 = vector.broadcast %cst_7 : f32 to vector<2x1xf32>
    %15 = arith.mulf %13, %14 : vector<2x1xf32>
    %c1 = arith.constant 1 : index
    %c0_8 = arith.constant 0 : index
    %16 = vector.load %arg2[%c1, %c0_8] : memref<3x1024xf32, #tpu.memory_space<vmem>>, vector<1x1024xf32>
    %17 = vector.broadcast %15 : vector<2x1xf32> to vector<2x1024xf32>
    %18 = vector.broadcast %16 : vector<1x1024xf32> to vector<2x1024xf32>
    %19 = arith.mulf %17, %18 : vector<2x1024xf32>
    %20 = arith.addf %10, %19 : vector<2x1024xf32>
    %c0_9 = arith.constant 0 : index
    %c512 = arith.constant 512 : index
    %21 = vector.load %arg1[%c0_9, %c512] : memref<2x768xf32, #tpu.memory_space<vmem>>, vector<2x256xf32>
    %cst_10 = arith.constant dense<0.000000e+00> : vector<2xf32>
    %22 = vector.multi_reduction <add>, %21, %cst_10 [1] : vector<2x256xf32> to vector<2xf32>
    %23 = vector.shape_cast %22 : vector<2xf32> to vector<2x1xf32>
    %cst_11 = arith.constant 3.906250e-03 : f32
    %24 = vector.broadcast %cst_11 : f32 to vector<2x1xf32>
    %25 = arith.mulf %23, %24 : vector<2x1xf32>
    %c2 = arith.constant 2 : index
    %c0_12 = arith.constant 0 : index
    %26 = vector.load %arg2[%c2, %c0_12] : memref<3x1024xf32, #tpu.memory_space<vmem>>, vector<1x1024xf32>
    %27 = vector.broadcast %25 : vector<2x1xf32> to vector<2x1024xf32>
    %28 = vector.broadcast %26 : vector<1x1024xf32> to vector<2x1024xf32>
    %29 = arith.mulf %27, %28 : vector<2x1024xf32>
    %30 = arith.addf %20, %29 : vector<2x1024xf32>
    %c0_13 = arith.constant 0 : index
    %c0_14 = arith.constant 0 : index
    %31 = vector.load %arg3[%c0_13, %c0_14] : memref<1024x256xf32, #tpu.memory_space<vmem>>, vector<1024x256xf32>
    %cst_15 = arith.constant dense<0.000000e+00> : vector<2x256xf32>
    %32 = tpu.matmul %30, %31, %cst_15 {dimension_numbers = #tpu.dot_dimension_numbers<[1], [0], [0], [1], [0, 0, 1, 1], [], []>} : vector<2x1024xf32>, vector<1024x256xf32>, vector<2x256xf32> -> vector<2x256xf32>
    %c0_16 = arith.constant 0 : index
    %c0_17 = arith.constant 0 : index
    %33 = vector.load %arg4[%c0_16, %c0_17] : memref<1x256xf32, #tpu.memory_space<vmem>>, vector<1x256xf32>
    %34 = vector.broadcast %33 : vector<1x256xf32> to vector<2x256xf32>
    %35 = arith.addf %32, %34 : vector<2x256xf32>
    %cst_18 = arith.constant 0.000000e+00 : f32
    %36 = vector.broadcast %cst_18 : f32 to vector<2x256xf32>
    %37 = arith.cmpf oge, %35, %36 : vector<2x256xf32>
    %cst_19 = arith.constant 0.00999999977 : f32
    %38 = vector.broadcast %cst_19 : f32 to vector<2x256xf32>
    %39 = arith.mulf %38, %35 : vector<2x256xf32>
    %40 = arith.select %37, %35, %39 : vector<2x256xi1>, vector<2x256xf32>
    %c0_20 = arith.constant 0 : index
    %c0_21 = arith.constant 0 : index
    %41 = vector.load %arg5[%c0_20, %c0_21] : memref<256x256xf32, #tpu.memory_space<vmem>>, vector<256x256xf32>
    %cst_22 = arith.constant dense<0.000000e+00> : vector<2x256xf32>
    %42 = tpu.matmul %40, %41, %cst_22 {dimension_numbers = #tpu.dot_dimension_numbers<[1], [0], [0], [1], [0, 0, 1, 1], [], []>} : vector<2x256xf32>, vector<256x256xf32>, vector<2x256xf32> -> vector<2x256xf32>
    %c0_23 = arith.constant 0 : index
    %c0_24 = arith.constant 0 : index
    %43 = vector.load %arg6[%c0_23, %c0_24] : memref<1x256xf32, #tpu.memory_space<vmem>>, vector<1x256xf32>
    %44 = vector.broadcast %43 : vector<1x256xf32> to vector<2x256xf32>
    %45 = arith.addf %42, %44 : vector<2x256xf32>
    %cst_25 = arith.constant 0.000000e+00 : f32
    %46 = vector.broadcast %cst_25 : f32 to vector<2x256xf32>
    %47 = arith.cmpf oge, %45, %46 : vector<2x256xf32>
    %cst_26 = arith.constant 0.00999999977 : f32
    %48 = vector.broadcast %cst_26 : f32 to vector<2x256xf32>
    %49 = arith.mulf %48, %45 : vector<2x256xf32>
    %50 = arith.select %47, %45, %49 : vector<2x256xi1>, vector<2x256xf32>
    %c0_27 = arith.constant 0 : index
    %c0_28 = arith.constant 0 : index
    %51 = vector.load %arg7[%c0_27, %c0_28] : memref<256x256xf32, #tpu.memory_space<vmem>>, vector<256x256xf32>
    %cst_29 = arith.constant dense<0.000000e+00> : vector<2x256xf32>
    %52 = tpu.matmul %50, %51, %cst_29 {dimension_numbers = #tpu.dot_dimension_numbers<[1], [0], [0], [1], [0, 0, 1, 1], [], []>} : vector<2x256xf32>, vector<256x256xf32>, vector<2x256xf32> -> vector<2x256xf32>
    %c0_30 = arith.constant 0 : index
    %c0_31 = arith.constant 0 : index
    %53 = vector.load %arg8[%c0_30, %c0_31] : memref<1x256xf32, #tpu.memory_space<vmem>>, vector<1x256xf32>
    %54 = vector.broadcast %53 : vector<1x256xf32> to vector<2x256xf32>
    %55 = arith.addf %52, %54 : vector<2x256xf32>
    %56 = arith.mulf %55, %55 : vector<2x256xf32>
    %cst_32 = arith.constant dense<0.000000e+00> : vector<2xf32>
    %57 = vector.multi_reduction <add>, %56, %cst_32 [1] : vector<2x256xf32> to vector<2xf32>
    %58 = vector.shape_cast %57 : vector<2xf32> to vector<2x1xf32>
    %59 = math.rsqrt %58 : vector<2x1xf32>
    %60 = vector.broadcast %59 : vector<2x1xf32> to vector<2x256xf32>
    %61 = arith.mulf %55, %60 : vector<2x256xf32>
    %c0_33 = arith.constant 0 : index
    %c0_34 = arith.constant 0 : index
    %62 = vector.load %arg9[%c0_33, %c0_34] : memref<2x256xf32, #tpu.memory_space<vmem>>, vector<2x256xf32>
    tpu.vector_store %arg9[%c0_33, %c0_34], %61 {strides = array<i32>} : memref<2x256xf32, #tpu.memory_space<vmem>>, vector<2x256xf32>,
    return
  }
  func.func @transform_0(%arg0: i32) -> (i32, i32) {
    %c0_i32 = arith.constant 0 : i32
    %c0_i32_0 = arith.constant 0 : i32
    return %arg0, %c0_i32 : i32, i32
  }
  func.func @transform_1(%arg0: i32) -> (i32, i32) {
    %c0_i32 = arith.constant 0 : i32
    %c0_i32_0 = arith.constant 0 : i32
    %c0_i32_1 = arith.constant 0 : i32
    return %c0_i32, %c0_i32_0 : i32, i32
  }
  func.func @transform_2(%arg0: i32) -> (i32, i32) {
    %c0_i32 = arith.constant 0 : i32
    %c0_i32_0 = arith.constant 0 : i32
    %c0_i32_1 = arith.constant 0 : i32
    return %c0_i32, %c0_i32_0 : i32, i32
  }
  func.func @transform_3(%arg0: i32) -> (i32, i32) {
    %c0_i32 = arith.constant 0 : i32
    %c0_i32_0 = arith.constant 0 : i32
    %c0_i32_1 = arith.constant 0 : i32
    return %c0_i32, %c0_i32_0 : i32, i32
  }
  func.func @transform_4(%arg0: i32) -> (i32, i32) {
    %c0_i32 = arith.constant 0 : i32
    %c0_i32_0 = arith.constant 0 : i32
    %c0_i32_1 = arith.constant 0 : i32
    return %c0_i32, %c0_i32_0 : i32, i32
  }
  func.func @transform_5(%arg0: i32) -> (i32, i32) {
    %c0_i32 = arith.constant 0 : i32
    %c0_i32_0 = arith.constant 0 : i32
    %c0_i32_1 = arith.constant 0 : i32
    return %c0_i32, %c0_i32_0 : i32, i32
  }
  func.func @transform_6(%arg0: i32) -> (i32, i32) {
    %c0_i32 = arith.constant 0 : i32
    %c0_i32_0 = arith.constant 0 : i32
    %c0_i32_1 = arith.constant 0 : i32
    return %c0_i32, %c0_i32_0 : i32, i32
  }
  func.func @transform_7(%arg0: i32) -> (i32, i32) {
    %c0_i32 = arith.constant 0 : i32
    %c0_i32_0 = arith.constant 0 : i32
    %c0_i32_1 = arith.constant 0 : i32
    return %c0_i32, %c0_i32_0 : i32, i32
  }
  func.func @transform_8(%arg0: i32) -> (i32, i32) {
    %c0_i32 = arith.constant 0 : i32
    %c0_i32_0 = arith.constant 0 : i32
    return %arg0, %c0_i32 : i32, i32
  }
}

</mosaic_0001>

<bundles_post_ra>
// kernel: tpu_custom_call.1
= control target key start
LH: loop header
LB: loop body
LE: loop exit
PB: predicated region body
PF: predicated region fallthrough
CT: control target
= control target key end

     0   :  { %13 = vsyncpa [#allocation3], 0  ;;  %s1551_s0 = inlined_call_operand.hbm [shape: f32[2,768], index: 0, kind: input, shape index: {}]   ;;  %s1552_s1 = inlined_call_operand.hbm [shape: f32[3,1024], index: 1, kind: input, shape index: {}]   ;;  %s1553_s2 = inlined_call_operand.hbm [shape: f32[1024,256], index: 2, kind: input, shape index: {}]   ;;  %s1554_s3 = inlined_call_operand.vmem [shape: f32[1,256], index: 3, kind: input, shape index: {}]   ;;  %s1555_s4 = inlined_call_operand.hbm [shape: f32[256,256], index: 4, kind: input, shape index: {}]   ;;  %s1556_s5 = inlined_call_operand.vmem [shape: f32[1,256], index: 5, kind: input, shape index: {}]   ;;  %s1557_s6 = inlined_call_operand.hbm [shape: f32[256,256], index: 6, kind: input, shape index: {}]   ;;  %s1558_s7 = inlined_call_operand.vmem [shape: f32[1,256], index: 7, kind: input, shape index: {}]   ;;  %s1559_s8 = inlined_call_operand.hbm [shape: f32[2,256], index: 8, kind: output, shape index: {}]  }
   0x1   :  { %14 = vsyncpa [#allocation6], 0 }
   0x2   :  { %15 = vsyncpa [#allocation9], 0 }
   0x3   :  { %16 = vsyncpa [#allocation4], 0  ;;  %s1364_s27 = smov [#allocation5]  }
   0x4   :  { %s33_s28 = sshll.u32 %s1364_s27, 4  ;;  %s34_s28 = int_to_ptr.vmem [resolvable:$true] %s33_s28 }
   0x5   :  { %s1244_s29 = scalar_lea.vmem %s34_s28, 512  ;;  %p1249_p1 = scmp.lt.s32.totalorder %s34_s28, %s34_s28 }
   0x6   :  { %p1245_p0 = scmp.ne.s32.totalorder %s34_s28, %s1244_s29  ;;  %p1250_p2 = scmp.lt.s32.totalorder %s1244_s29, %s1244_s29 }
   0x8   :  { %p1251_p3 = por %p1250_p2, %p1249_p1 }
   0xa   :  { %p1252_p4 = pnand %p1251_p3, %p1245_p0 }
   0xc   :  { %1255 = shalt.err (!%p1252_p4)
}
   0xd   :  { %36 = dma.hbm_to_vmem [thread:$0]  %s1552_s1, 512, %s34_s28, [#allocation6]  }
   0xe   :  { %s1365_s10 = smov [#allocation8]   ;;  %s1366_s12 = smov [#allocation2]  }
   0xf   :  { %s56_s11 = sshll.u32 %s1365_s10, 4  ;;  %s23_s13 = sshll.u32 %s1366_s12, 4  ;;  %s57_s11 = int_to_ptr.vmem [resolvable:$true] %s56_s11  ;;  %s24_s13 = int_to_ptr.vmem [resolvable:$true] %s23_s13 }
  0x10   :  { %s1264_s14 = scalar_lea.vmem %s57_s11, 8192  ;;  %p1269_p6 = scmp.lt.s32.totalorder %s57_s11, %s57_s11 }
  0x11   :  { %p1265_p5 = scmp.ne.s32.totalorder %s57_s11, %s1264_s14  ;;  %p1270_p7 = scmp.lt.s32.totalorder %s1264_s14, %s1264_s14 }
  0x13   :  { %p1271_p8 = por %p1270_p7, %p1269_p6 }
  0x15   :  { %p1272_p9 = pnand %p1271_p8, %p1265_p5 }
  0x17   :  { %1275 = shalt.err (!%p1272_p9)
}
  0x18   :  { %s1367_s15 = smov 256   ;;  %s1368_s16 = smov 16  }
  0x19   :  { %62 = dma.hbm_to_vmem [thread:$0]  %s1555_s4, 8192, %s57_s11, [#allocation9], %s1367_s15, %s1367_s15, %s1368_s16  }
  0x1a   :  { %s1284_s1 = scalar_lea.vmem %s24_s13, 192  ;;  %p1289_p11 = scmp.lt.s32.totalorder %s24_s13, %s24_s13 }
  0x1b   :  { %p1285_p10 = scmp.ne.s32.totalorder %s24_s13, %s1284_s1  ;;  %p1290_p12 = scmp.lt.s32.totalorder %s1284_s1, %s1284_s1 }
  0x1d   :  { %p1291_p13 = por %p1290_p12, %p1289_p11 }
  0x1f   :  { %p1292_p0 = pnand %p1291_p13, %p1285_p10 }
  0x21   :  { %1295 = shalt.err (!%p1292_p0)
}
  0x22   :  { %26 = dma.hbm_to_vmem [thread:$0]  %s1551_s0, 192, %s24_s13, [#allocation3]  }
  0x23   :  { %s1369_s21 = smov [#allocation7]   ;;  %s1370_s23 = smov [#allocation10]  }
  0x24   :  { %s42_s22 = sshll.u32 %s1369_s21, 4  ;;  %s70_s24 = sshll.u32 %s1370_s23, 4  ;;  %s43_s22 = int_to_ptr.vmem [resolvable:$true] %s42_s22  ;;  %s71_s24 = int_to_ptr.vmem [resolvable:$true] %s70_s24 }
  0x25   :  { %s1304_s25 = scalar_lea.vmem %s43_s22, 32768  ;;  %p1309_p2 = scmp.lt.s32.totalorder %s43_s22, %s43_s22 }
  0x26   :  { %p1305_p1 = scmp.ne.s32.totalorder %s43_s22, %s1304_s25  ;;  %p1310_p3 = scmp.lt.s32.totalorder %s1304_s25, %s1304_s25 }
  0x28   :  { %p1311_p4 = por %p1310_p3, %p1309_p2 }
  0x2a   :  { %p1312_p5 = pnand %p1311_p4, %p1305_p1 }
  0x2c   :  { %1315 = shalt.err (!%p1312_p5)
}
  0x2d   :  { %48 = dma.hbm_to_vmem [thread:$0]  %s1553_s2, 32768, %s43_s22, [#allocation6], %s1367_s15, %s1367_s15, %s1368_s16  }
  0x2e   :  { %s1324_s0 = scalar_lea.vmem %s71_s24, 8192  ;;  %p1329_p7 = scmp.lt.s32.totalorder %s71_s24, %s71_s24 }
  0x2f   :  { %p1325_p6 = scmp.ne.s32.totalorder %s71_s24, %s1324_s0  ;;  %p1330_p8 = scmp.lt.s32.totalorder %s1324_s0, %s1324_s0 }
  0x31   :  { %p1331_p9 = por %p1330_p8, %p1329_p7 }
  0x33   :  { %p1332_p10 = pnand %p1331_p9, %p1325_p6 }
  0x35   :  { %1335 = shalt.err (!%p1332_p10)
}
  0x36   :  { %76 = dma.hbm_to_vmem [thread:$0]  %s1557_s6, 8192, %s71_s24, [#allocation9], %s1367_s15, %s1367_s15, %s1368_s16  }
  0x37   :  { %1356 = dma.done.wait [#allocation3], 192  }
  0x38   :  { %1357 = vsyncadd [#allocation3], 4294967104 }
  0x39   :  { %1358 = dma.done.wait [#allocation6], 33280  }
  0x3a   :  { %1359 = vsyncadd [#allocation6], 4294934016 }
  0x3b   :  { %1360 = dma.done.wait [#allocation9], 16384  }
  0x3c   :  { %1361 = vsyncadd [#allocation9], 4294950912  ;;  %vm106_vm0 = vcmask 1041408   ;;  %v356_v1 = vld [vmem:[#allocation7 + $0xf8] sm:$0xff]  ;;  %v355_v6 = vld [vmem:[#allocation7 + $0xf0] sm:$0xff] }
  0x3d   :  { %v1222_v0 = vld.sshfl [vmem:[#allocation2] sm:$0x33 pattern:$0x76325410]  ;;  %v420_v2 = vld [vmem:[#allocation7 + $0x2f8] sm:$0xff]  ;;  %593 = vmatprep.subr.mxu0 %v356_v1  ;;  %v354_v14 = vld [vmem:[#allocation7 + $0xe8] sm:$0xff] }
  0x3e   :  { %v103_v3 = vcombine.high %v1222_v0, %v1222_v0  ;;  %v107_v4 = vsel %vm106_vm0, %v1222_v0, 0.0  ;;  %v1223_v5 = vld.sshfl [vmem:[#allocation2 + $0x4] sm:$0x33 pattern:$0x76325410]  ;;  %664 = vmatprep.subr.mxu1 %v420_v2  ;;  %594 = vmatpush1.msra.mxu0 %v355_v6  ;;  %v419_v9 = vld [vmem:[#allocation7 + $0x2f0] sm:$0xff] }
  0x3f   :  { %v180_v7 = vcombine.high %v1223_v5, %v1223_v5  ;;  %v1224_v8 = vld.sshfl [vmem:[#allocation2 + $0x8] sm:$0x33 pattern:$0x76325410]  ;;  %v183_v11 = vsel %vm106_vm0, %v1223_v5, 0.0  ;;  %665 = vmatpush1.msra.mxu1 %v419_v9  ;;  %v418_v15 = vld [vmem:[#allocation7 + $0x2e8] sm:$0xff]  ;;  %595 = vmatprep.subr.mxu0 %v354_v14 }
  0x40   :  { %v108_v10 = vsel %vm106_vm0, %v103_v3, 0.0  ;;  %v257_v12 = vcombine.high %v1224_v8, %v1224_v8  ;;  %v260_v13 = vsel %vm106_vm0, %v1224_v8, 0.0  ;;  %v353_v16 = vld [vmem:[#allocation7 + $0xe0] sm:$0xff]  ;;  %666 = vmatprep.subr.mxu1 %v418_v15  ;;  %v352_v20 = vld [vmem:[#allocation7 + $0xd8] sm:$0xff]  ;;  %v351_v23 = vld [vmem:[#allocation7 + $0xd0] sm:$0xff] }
  0x41   :  { %v109_v17 = vadd.f32 %v108_v10, %v107_v4  ;;  %v184_v18 = vsel %vm106_vm0, %v180_v7, 0.0  ;;  %v417_v19 = vld [vmem:[#allocation7 + $0x2e0] sm:$0xff]  ;;  %v416_v21 = vld [vmem:[#allocation7 + $0x2d8] sm:$0xff]  ;;  %596 = vmatpush1.msra.mxu0 %v353_v16  ;;  %v415_v24 = vld [vmem:[#allocation7 + $0x2d0] sm:$0xff] }
  0x42   :  { %v261_v22 = vsel %vm106_vm0, %v257_v12, 0.0  ;;  %667 = vmatpush1.msra.mxu1 %v417_v19  ;;  %v185_v25 = vadd.f32 %v184_v18, %v183_v11  ;;  %597 = vmatprep.subr.mxu0 %v352_v20  ;;  %v350_v27 = vld [vmem:[#allocation7 + $0xc8] sm:$0xff]  ;;  %v349_v29 = vld [vmem:[#allocation7 + $0xc0] sm:$0xff]  ;;  %v348_v31 = vld [vmem:[#allocation7 + $0xb8] sm:$0xff] }
  0x43   :  { %110 = vadd.xlane.f32.xlu0 %v109_v17  ;;  %v262_v26 = vadd.f32 %v261_v22, %v260_v13  ;;  %v414_v28 = vld [vmem:[#allocation7 + $0x2c8] sm:$0xff]  ;;  %668 = vmatprep.subr.mxu1 %v416_v21  ;;  %v413_v30 = vld [vmem:[#allocation7 + $0x2c0] sm:$0xff]  ;;  %v412_v32 = vld [vmem:[#allocation7 + $0x2b8] sm:$0xff] }
  0x44   :  { %598 = vmatpush1.msra.mxu0 %v351_v23  ;;  %669 = vmatpush1.msra.mxu1 %v415_v24  ;;  %v347_v33 = vld [vmem:[#allocation7 + $0xb0] sm:$0xff]  ;;  %v346_v35 = vld [vmem:[#allocation7 + $0xa8] sm:$0xff]  ;;  %v345_v37 = vld [vmem:[#allocation7 + $0xa0] sm:$0xff] }
  0x45   :  { %263 = vadd.xlane.f32.xlu1 %v262_v26  ;;  %599 = vmatprep.subr.mxu0 %v350_v27  ;;  %v411_v34 = vld [vmem:[#allocation7 + $0x2b0] sm:$0xff]  ;;  %v410_v36 = vld [vmem:[#allocation7 + $0x2a8] sm:$0xff]  ;;  %v409_v38 = vld [vmem:[#allocation7 + $0x2a0] sm:$0xff] }
  0x46   :  { %670 = vmatprep.subr.mxu1 %v414_v28  ;;  %600 = vmatpush1.msra.mxu0 %v349_v29  ;;  %v344_v39 = vld [vmem:[#allocation7 + $0x98] sm:$0xff]  ;;  %v343_v41 = vld [vmem:[#allocation7 + $0x90] sm:$0xff]  ;;  %v342_v43 = vld [vmem:[#allocation7 + $0x88] sm:$0xff] }
  0x47   :  { %186 = vadd.xlane.f32.xlu0 %v185_v25  ;;  %671 = vmatpush1.msra.mxu1 %v413_v30  ;;  %v408_v40 = vld [vmem:[#allocation7 + $0x298] sm:$0xff]  ;;  %v407_v42 = vld [vmem:[#allocation7 + $0x290] sm:$0xff]  ;;  %v406_v44 = vld [vmem:[#allocation7 + $0x288] sm:$0xff]  ;;  %v115_v30 = vlaneseq }
  0x48   :  { %601 = vmatprep.subr.mxu0 %v348_v31  ;;  %672 = vmatprep.subr.mxu1 %v412_v32  ;;  %v341_v45 = vld [vmem:[#allocation7 + $0x80] sm:$0xff]  ;;  %v340_v47 = vld [vmem:[#allocation7 + $0x78] sm:$0xff]  ;;  %v339_v49 = vld [vmem:[#allocation7 + $0x70] sm:$0xff] }
  0x49   :  { %602 = vmatpush1.msra.mxu0 %v347_v33  ;;  %673 = vmatpush1.msra.mxu1 %v411_v34  ;;  %v405_v46 = vld [vmem:[#allocation7 + $0x280] sm:$0xff]  ;;  %v404_v48 = vld [vmem:[#allocation7 + $0x278] sm:$0xff]  ;;  %v403_v50 = vld [vmem:[#allocation7 + $0x270] sm:$0xff] }
  0x4a   :  { %603 = vmatprep.subr.mxu0 %v346_v35  ;;  %674 = vmatprep.subr.mxu1 %v410_v36  ;;  %v338_v51 = vld [vmem:[#allocation7 + $0x68] sm:$0xff]  ;;  %v337_v53 = vld [vmem:[#allocation7 + $0x60] sm:$0xff]  ;;  %v336_v55 = vld [vmem:[#allocation7 + $0x58] sm:$0xff] }
  0x4b   :  { %604 = vmatpush1.msra.mxu0 %v345_v37  ;;  %675 = vmatpush1.msra.mxu1 %v409_v38  ;;  %v402_v52 = vld [vmem:[#allocation7 + $0x268] sm:$0xff]  ;;  %v401_v54 = vld [vmem:[#allocation7 + $0x260] sm:$0xff]  ;;  %v400_v56 = vld [vmem:[#allocation7 + $0x258] sm:$0xff] }
  0x4c   :  { %605 = vmatprep.subr.mxu0 %v344_v39  ;;  %676 = vmatprep.subr.mxu1 %v408_v40  ;;  %v335_v57 = vld [vmem:[#allocation7 + $0x50] sm:$0xff]  ;;  %v334_v59 = vld [vmem:[#allocation7 + $0x48] sm:$0xff]  ;;  %v333_v61 = vld [vmem:[#allocation7 + $0x40] sm:$0xff]  ;;  %v1447_v39 = vshrl.u32 %v115_v30, 7 }
  0x4d   :  { %606 = vmatpush1.msra.mxu0 %v343_v41  ;;  %677 = vmatpush1.msra.mxu1 %v407_v42  ;;  %v399_v58 = vld [vmem:[#allocation7 + $0x250] sm:$0xff]  ;;  %v398_v60 = vld [vmem:[#allocation7 + $0x248] sm:$0xff]  ;;  %v397_v62 = vld [vmem:[#allocation7 + $0x240] sm:$0xff] }
  0x4e   :  { %607 = vmatprep.subr.mxu0 %v342_v43  ;;  %678 = vmatprep.subr.mxu1 %v406_v44  ;;  %v332_v63 = vld [vmem:[#allocation7 + $0x38] sm:$0xff]  ;;  %v331_v1 = vld [vmem:[#allocation7 + $0x30] sm:$0xff]  ;;  %v330_v3 = vld [vmem:[#allocation7 + $0x28] sm:$0xff]  ;;  %v1474_v30 = vsub.s32 1, %v1447_v39 }
  0x4f   :  { %608 = vmatpush1.msra.mxu0 %v341_v45  ;;  %679 = vmatpush1.msra.mxu1 %v405_v46  ;;  %v396_v0 = vld [vmem:[#allocation7 + $0x238] sm:$0xff]  ;;  %v395_v2 = vld [vmem:[#allocation7 + $0x230] sm:$0xff]  ;;  %v394_v4 = vld [vmem:[#allocation7 + $0x228] sm:$0xff] }
  0x50   :  { %609 = vmatprep.subr.mxu0 %v340_v47  ;;  %680 = vmatprep.subr.mxu1 %v404_v48  ;;  %v329_v5 = vld [vmem:[#allocation7 + $0x20] sm:$0xff]  ;;  %v328_v7 = vld [vmem:[#allocation7 + $0x18] sm:$0xff]  ;;  %v327_v9 = vld [vmem:[#allocation7 + $0x10] sm:$0xff] }
  0x51   :  { %610 = vmatpush1.msra.mxu0 %v339_v49  ;;  %681 = vmatpush1.msra.mxu1 %v403_v50  ;;  %v393_v6 = vld [vmem:[#allocation7 + $0x220] sm:$0xff]  ;;  %v392_v8 = vld [vmem:[#allocation7 + $0x218] sm:$0xff]  ;;  %v391_v10 = vld [vmem:[#allocation7 + $0x210] sm:$0xff]  ;;  %v1450_v50 = vsub.s32 4, %v1447_v39 }
  0x52   :  { %611 = vmatprep.subr.mxu0 %v338_v51  ;;  %682 = vmatprep.subr.mxu1 %v402_v52  ;;  %v326_v11 = vld [vmem:[#allocation7 + $0x8] sm:$0xff]  ;;  %v325_v13 = vld [vmem:[#allocation7] sm:$0xff]  ;;  %v388_v15 = vld [vmem:[#allocation7 + $0x1f8] sm:$0xff]  ;;  %v1453_v51 = vsub.s32 6, %v1447_v39 }
  0x53   :  { %612 = vmatpush1.msra.mxu0 %v337_v53  ;;  %683 = vmatpush1.msra.mxu1 %v401_v54  ;;  %v390_v12 = vld [vmem:[#allocation7 + $0x208] sm:$0xff]  ;;  %v389_v14 = vld [vmem:[#allocation7 + $0x200] sm:$0xff]  ;;  %v452_v16 = vld [vmem:[#allocation7 + $0x3f8] sm:$0xff] }
  0x54   :  { %613 = vmatprep.subr.mxu0 %v336_v55  ;;  %684 = vmatprep.subr.mxu1 %v400_v56  ;;  %v387_v17 = vld [vmem:[#allocation7 + $0x1f0] sm:$0xff]  ;;  %v386_v19 = vld [vmem:[#allocation7 + $0x1e8] sm:$0xff]  ;;  %v385_v21 = vld [vmem:[#allocation7 + $0x1e0] sm:$0xff] }
  0x55   :  { %614 = vmatpush1.msra.mxu0 %v335_v57  ;;  %685 = vmatpush1.msra.mxu1 %v399_v58  ;;  %v451_v18 = vld [vmem:[#allocation7 + $0x3f0] sm:$0xff]  ;;  %v450_v20 = vld [vmem:[#allocation7 + $0x3e8] sm:$0xff]  ;;  %v449_v22 = vld [vmem:[#allocation7 + $0x3e0] sm:$0xff] }
  0x56   :  { %615 = vmatprep.subr.mxu0 %v334_v59  ;;  %686 = vmatprep.subr.mxu1 %v398_v60  ;;  %v384_v23 = vld [vmem:[#allocation7 + $0x1d8] sm:$0xff]  ;;  %v383_v25 = vld [vmem:[#allocation7 + $0x1d0] sm:$0xff]  ;;  %v382_v27 = vld [vmem:[#allocation7 + $0x1c8] sm:$0xff] }
  0x57   :  { %616 = vmatpush1.msra.mxu0 %v333_v61  ;;  %687 = vmatpush1.msra.mxu1 %v397_v62  ;;  %v448_v24 = vld [vmem:[#allocation7 + $0x3d8] sm:$0xff]  ;;  %v447_v26 = vld [vmem:[#allocation7 + $0x3d0] sm:$0xff]  ;;  %v446_v28 = vld [vmem:[#allocation7 + $0x3c8] sm:$0xff] }
  0x58   :  { %617 = vmatprep.subr.mxu0 %v332_v63  ;;  %688 = vmatprep.subr.mxu1 %v396_v0  ;;  %v381_v29 = vld [vmem:[#allocation7 + $0x1c0] sm:$0xff]  ;;  %v380_v32 = vld [vmem:[#allocation7 + $0x1b8] sm:$0xff]  ;;  %v379_v34 = vld [vmem:[#allocation7 + $0x1b0] sm:$0xff] }
  0x59   :  { %618 = vmatpush1.msra.mxu0 %v331_v1  ;;  %689 = vmatpush1.msra.mxu1 %v395_v2  ;;  %v445_v31 = vld [vmem:[#allocation7 + $0x3c0] sm:$0xff]  ;;  %v444_v33 = vld [vmem:[#allocation7 + $0x3b8] sm:$0xff]  ;;  %v443_v35 = vld [vmem:[#allocation7 + $0x3b0] sm:$0xff] }
  0x5a   :  { %619 = vmatprep.subr.mxu0 %v330_v3  ;;  %690 = vmatprep.subr.mxu1 %v394_v4  ;;  %v378_v36 = vld [vmem:[#allocation7 + $0x1a8] sm:$0xff]  ;;  %v377_v38 = vld [vmem:[#allocation7 + $0x1a0] sm:$0xff]  ;;  %v376_v41 = vld [vmem:[#allocation7 + $0x198] sm:$0xff] }
  0x5b   :  { %620 = vmatpush1.msra.mxu0 %v329_v5  ;;  %691 = vmatpush1.msra.mxu1 %v393_v6  ;;  %v442_v37 = vld [vmem:[#allocation7 + $0x3a8] sm:$0xff]  ;;  %v441_v40 = vld [vmem:[#allocation7 + $0x3a0] sm:$0xff]  ;;  %v440_v42 = vld [vmem:[#allocation7 + $0x398] sm:$0xff] }
  0x5c   :  { %621 = vmatprep.subr.mxu0 %v328_v7  ;;  %692 = vmatprep.subr.mxu1 %v392_v8  ;;  %v375_v43 = vld [vmem:[#allocation7 + $0x190] sm:$0xff]  ;;  %v374_v45 = vld [vmem:[#allocation7 + $0x188] sm:$0xff]  ;;  %v373_v47 = vld [vmem:[#allocation7 + $0x180] sm:$0xff] }
  0x5d   :  { %622 = vmatpush1.msra.mxu0 %v327_v9  ;;  %693 = vmatpush1.msra.mxu1 %v391_v10  ;;  %v439_v44 = vld [vmem:[#allocation7 + $0x390] sm:$0xff]  ;;  %v438_v46 = vld [vmem:[#allocation7 + $0x388] sm:$0xff]  ;;  %v437_v48 = vld [vmem:[#allocation7 + $0x380] sm:$0xff] }
  0x5e   :  { %623 = vmatprep.subr.mxu0 %v326_v11  ;;  %694 = vmatprep.subr.mxu1 %v390_v12  ;;  %v372_v49 = vld [vmem:[#allocation7 + $0x178] sm:$0xff]  ;;  %v371_v56 = vld [vmem:[#allocation7 + $0x170] sm:$0xff]  ;;  %v370_v58 = vld [vmem:[#allocation7 + $0x168] sm:$0xff] }
  0x5f   :  { %624 = vmatpush1.msra.mxu0 %v325_v13  ;;  %695 = vmatpush1.msra.mxu1 %v389_v14  ;;  %v1455_v52 = vld [vmem:[#allocation5] ss:$4 sm:$0xff]  ;;  %v1457_v53 = vld [vmem:[#allocation5 + $0x1] ss:$4 sm:$0xff]  ;;  %v1459_v54 = vld [vmem:[#allocation5 + $0x2] ss:$4 sm:$0xff] }
  0x60   :  { %625 = vmatprep.subr.mxu0 %v388_v15  ;;  %696 = vmatprep.subr.mxu1 %v452_v16  ;;  %v436_v55 = vld [vmem:[#allocation7 + $0x378] sm:$0xff]  ;;  %v435_v57 = vld [vmem:[#allocation7 + $0x370] sm:$0xff]  ;;  %v434_v59 = vld [vmem:[#allocation7 + $0x368] sm:$0xff]  ;;  %v134_v61 = vrot.slane %v1455_v52, %v1450_v50  ;;  %v211_v62 = vrot.slane %v1457_v53, %v1450_v50  ;;  %v288_v63 = vrot.slane %v1459_v54, %v1450_v50 }
  0x61   :  { %626 = vmatpush2.msra.mxu0 %v387_v17  ;;  %697 = vmatpush2.msra.mxu1 %v451_v18  ;;  %v369_v60 = vld [vmem:[#allocation7 + $0x160] sm:$0xff]  ;;  %v368_v1 = vld [vmem:[#allocation7 + $0x158] sm:$0xff]  ;;  %v142_v2 = vrot.slane %v1455_v52, %v1453_v51  ;;  %v219_v3 = vrot.slane %v1457_v53, %v1453_v51  ;;  %v296_v4 = vrot.slane %v1459_v54, %v1453_v51  ;;  %v367_v6 = vld [vmem:[#allocation7 + $0x150] sm:$0xff] }
  0x62   :  { %627 = vmatprep.subr.mxu0 %v386_v19  ;;  %698 = vmatprep.subr.mxu1 %v450_v20  ;;  %v433_v0 = vld [vmem:[#allocation7 + $0x360] sm:$0xff]  ;;  %v432_v5 = vld [vmem:[#allocation7 + $0x358] sm:$0xff]  ;;  %v431_v7 = vld [vmem:[#allocation7 + $0x350] sm:$0xff] }
  0x63   :  { %628 = vmatpush2.msra.mxu0 %v385_v21  ;;  %699 = vmatpush2.msra.mxu1 %v449_v22  ;;  %v366_v8 = vld [vmem:[#allocation7 + $0x148] sm:$0xff]  ;;  %v365_v10 = vld [vmem:[#allocation7 + $0x140] sm:$0xff]  ;;  %v364_v12 = vld [vmem:[#allocation7 + $0x138] sm:$0xff] }
  0x64   :  { %629 = vmatprep.subr.mxu0 %v384_v23  ;;  %700 = vmatprep.subr.mxu1 %v448_v24  ;;  %v430_v9 = vld [vmem:[#allocation7 + $0x348] sm:$0xff]  ;;  %v429_v11 = vld [vmem:[#allocation7 + $0x340] sm:$0xff]  ;;  %v428_v13 = vld [vmem:[#allocation7 + $0x338] sm:$0xff] }
  0x65   :  { %630 = vmatpush2.msra.mxu0 %v383_v25  ;;  %701 = vmatpush2.msra.mxu1 %v447_v26  ;;  %v363_v14 = vld [vmem:[#allocation7 + $0x130] sm:$0xff]  ;;  %v362_v16 = vld [vmem:[#allocation7 + $0x128] sm:$0xff]  ;;  %v361_v18 = vld [vmem:[#allocation7 + $0x120] sm:$0xff] }
  0x66   :  { %631 = vmatprep.subr.mxu0 %v382_v27  ;;  %702 = vmatprep.subr.mxu1 %v446_v28  ;;  %v427_v15 = vld [vmem:[#allocation7 + $0x330] sm:$0xff]  ;;  %v426_v17 = vld [vmem:[#allocation7 + $0x328] sm:$0xff]  ;;  %v425_v19 = vld [vmem:[#allocation7 + $0x320] sm:$0xff] }
  0x67   :  { %632 = vmatpush2.msra.mxu0 %v381_v29  ;;  %703 = vmatpush2.msra.mxu1 %v445_v31  ;;  %v360_v20 = vld [vmem:[#allocation7 + $0x118] sm:$0xff]  ;;  %v359_v22 = vld [vmem:[#allocation7 + $0x110] sm:$0xff]  ;;  %v358_v24 = vld [vmem:[#allocation7 + $0x108] sm:$0xff]  ;;  %v129_v31 = vsub.s32 3, %v1447_v39 }
  0x68   :  { %633 = vmatprep.subr.mxu0 %v380_v32  ;;  %704 = vmatprep.subr.mxu1 %v444_v33  ;;  %v424_v21 = vld [vmem:[#allocation7 + $0x318] sm:$0xff]  ;;  %v423_v23 = vld [vmem:[#allocation7 + $0x310] sm:$0xff]  ;;  %v422_v25 = vld [vmem:[#allocation7 + $0x308] sm:$0xff]  ;;  %v1478_v32 = vsub.s32 0, %v1447_v39  ;;  %v125_v33 = vsub.s32 2, %v1447_v39 }
  0x69   :  { %634 = vmatpush2.msra.mxu0 %v379_v34  ;;  %705 = vmatpush2.msra.mxu1 %v443_v35  ;;  %v357_v26 = vld [vmem:[#allocation7 + $0x100] sm:$0xff]  ;;  %v484_v28 = vld [vmem:[#allocation7 + $0x4f8] sm:$0xff]  ;;  %v137_v34 = vsub.s32 5, %v1447_v39  ;;  %v145_v35 = vsub.s32 7, %v1447_v39  ;;  %v543_v51 = vld [vmem:[#allocation7 + $0x6d0] sm:$0xff] }
  0x6a   :  { %635 = vmatprep.subr.mxu0 %v378_v36  ;;  %706 = vmatprep.subr.mxu1 %v442_v37  ;;  %v421_v27 = vld [vmem:[#allocation7 + $0x300] sm:$0xff]  ;;  %v548_v29 = vld [vmem:[#allocation7 + $0x6f8] sm:$0xff]  ;;  %v122_v36 = vrot.slane %v1455_v52, %v1474_v30  ;;  %v199_v37 = vrot.slane %v1457_v53, %v1474_v30  ;;  %v195_v39 = vrot.slane %v1457_v53, %v1478_v32 }
  0x6b   :  { %636 = vmatpush2.msra.mxu0 %v377_v38  ;;  %707 = vmatpush2.msra.mxu1 %v441_v40  ;;  %v130_v38 = vrot.slane %v1455_v52, %v129_v31  ;;  %v276_v40 = vrot.slane %v1459_v54, %v1474_v30 }
  0x6c   :  { %637 = vmatprep.subr.mxu0 %v376_v41  ;;  %708 = vmatprep.subr.mxu1 %v440_v42  ;;  %v207_v41 = vrot.slane %v1457_v53, %v129_v31  ;;  %v284_v42 = vrot.slane %v1459_v54, %v129_v31 }
  0x6d   :  { %638 = vmatpush2.msra.mxu0 %v375_v43  ;;  %709 = vmatpush2.msra.mxu1 %v439_v44  ;;  %v118_v43 = vrot.slane %v1455_v52, %v1478_v32 }
  0x6e   :  { %639 = vmatprep.subr.mxu0 %v374_v45  ;;  %710 = vmatprep.subr.mxu1 %v438_v46  ;;  %v126_v45 = vrot.slane %v1455_v52, %v125_v33  ;;  %v138_v46 = vrot.slane %v1455_v52, %v137_v34 }
  0x6f   :  { %640 = vmatpush2.msra.mxu0 %v373_v47  ;;  %711 = vmatpush2.msra.mxu1 %v437_v48  ;;  %v146_v47 = vrot.slane %v1455_v52, %v145_v35 }
  0x70   :  { %641 = vmatprep.subr.mxu0 %v372_v49  ;;  %712 = vmatprep.subr.mxu1 %v436_v55  ;;  %v272_v49 = vrot.slane %v1459_v54, %v1478_v32  ;;  %v203_v55 = vrot.slane %v1457_v53, %v125_v33 }
  0x71   :  { %642 = vmatpush2.msra.mxu0 %v371_v56  ;;  %713 = vmatpush2.msra.mxu1 %v435_v57  ;;  %v280_v56 = vrot.slane %v1459_v54, %v125_v33 }
  0x72   :  { %643 = vmatprep.subr.mxu0 %v370_v58  ;;  %714 = vmatprep.subr.mxu1 %v434_v59  ;;  %v215_v58 = vrot.slane %v1457_v53, %v137_v34  ;;  %v292_v59 = vrot.slane %v1459_v54, %v137_v34 }
  0x73   :  { %644 = vmatpush2.msra.mxu0 %v369_v60  ;;  %715 = vmatpush2.msra.mxu1 %v433_v0  ;;  %v223_v60 = vrot.slane %v1457_v53, %v145_v35  ;;  %v300_v0 = vrot.slane %v1459_v54, %v145_v35  ;;  %v478_v54 = vld [vmem:[#allocation7 + $0x4c8] sm:$0xff] }
  0x74   :  { %645 = vmatprep.subr.mxu0 %v368_v1  ;;  %716 = vmatprep.subr.mxu1 %v432_v5 }
  0x75   :  { %646 = vmatpush2.msra.mxu0 %v367_v6  ;;  %717 = vmatpush2.msra.mxu1 %v431_v7 }
  0x76   :  { %647 = vmatprep.subr.mxu0 %v366_v8  ;;  %718 = vmatprep.subr.mxu1 %v430_v9 }
  0x77   :  { %648 = vmatpush2.msra.mxu0 %v365_v10  ;;  %719 = vmatpush2.msra.mxu1 %v429_v11 }
  0x78   :  { %649 = vmatprep.subr.mxu0 %v364_v12  ;;  %720 = vmatprep.subr.mxu1 %v428_v13 }
  0x79   :  { %650 = vmatpush2.msra.mxu0 %v363_v14  ;;  %721 = vmatpush2.msra.mxu1 %v427_v15 }
  0x7a   :  { %651 = vmatprep.subr.mxu0 %v362_v16  ;;  %722 = vmatprep.subr.mxu1 %v426_v17 }
  0x7b   :  { %652 = vmatpush2.msra.mxu0 %v361_v18  ;;  %723 = vmatpush2.msra.mxu1 %v425_v19 }
  0x7c   :  { %653 = vmatprep.subr.mxu0 %v360_v20  ;;  %724 = vmatprep.subr.mxu1 %v424_v21 }
  0x7d   :  { %654 = vmatpush2.msra.mxu0 %v359_v22  ;;  %725 = vmatpush2.msra.mxu1 %v423_v23 }
  0x7e   :  { %655 = vmatprep.subr.mxu0 %v358_v24  ;;  %726 = vmatprep.subr.mxu1 %v422_v25 }
  0x7f   :  { %656 = vmatpush2.msra.mxu0 %v357_v26  ;;  %727 = vmatpush2.msra.mxu1 %v421_v27 }
  0x80   :  { %735 = vmatprep.subr.mxu0 %v484_v28  ;;  %806 = vmatprep.subr.mxu1 %v548_v29 }
  0xcc   :  { %v111_v44 = vpop.xlane.xlu0 %110 }
  0xcd   :  { %v112_v48 = vmul.f32 0.00390625, %v111_v44 }
  0xce   :  { %v264_v57 = vpop.xlane.xlu1 %263 }
  0xcf   :  { %v265_v1 = vmul.f32 0.00390625, %v264_v57  ;;  %v156_v5 = vmul.f32 %v122_v36, %v112_v48  ;;  %v158_v6 = vmul.f32 %v130_v38, %v112_v48  ;;  %v155_v7 = vmul.f32 %v118_v43, %v112_v48  ;;  %v476_v57 = vld [vmem:[#allocation7 + $0x4b8] sm:$0xff] }
  0xd0   :  { %v187_v8 = vpop.xlane.xlu0 %186  ;;  %v157_v9 = vmul.f32 %v126_v45, %v112_v48  ;;  %v160_v10 = vmul.f32 %v138_v46, %v112_v48  ;;  %v162_v11 = vmul.f32 %v146_v47, %v112_v48  ;;  %v159_v12 = vmul.f32 %v134_v61, %v112_v48  ;;  %v545_v45 = vld [vmem:[#allocation7 + $0x6e0] sm:$0xff]  ;;  %v480_v47 = vld [vmem:[#allocation7 + $0x4d8] sm:$0xff] }
  0xd1   :  { %v188_v13 = vmul.f32 0.00390625, %v187_v8  ;;  %v310_v14 = vmul.f32 %v276_v40, %v265_v1  ;;  %v312_v15 = vmul.f32 %v284_v42, %v265_v1  ;;  %v309_v16 = vmul.f32 %v272_v49, %v265_v1  ;;  %v479_v49 = vld [vmem:[#allocation7 + $0x4d0] sm:$0xff]  ;;  %v536_v8 = vld [vmem:[#allocation7 + $0x698] sm:$0xff] }
  0xd2   :  { %v311_v17 = vmul.f32 %v280_v56, %v265_v1  ;;  %v314_v18 = vmul.f32 %v292_v59, %v265_v1  ;;  %v316_v19 = vmul.f32 %v300_v0, %v265_v1  ;;  %v313_v20 = vmul.f32 %v288_v63, %v265_v1  ;;  %v541_v56 = vld [vmem:[#allocation7 + $0x6c0] sm:$0xff]  ;;  %v475_v59 = vld [vmem:[#allocation7 + $0x4b0] sm:$0xff]  ;;  %v474_v0 = vld [vmem:[#allocation7 + $0x4a8] sm:$0xff] }
  0xd3   :  { %v233_v21 = vmul.f32 %v199_v37, %v188_v13  ;;  %v235_v22 = vmul.f32 %v207_v41, %v188_v13  ;;  %v232_v23 = vmul.f32 %v195_v39, %v188_v13  ;;  %v234_v24 = vmul.f32 %v203_v55, %v188_v13  ;;  %v547_v41 = vld [vmem:[#allocation7 + $0x6f0] sm:$0xff]  ;;  %v481_v39 = vld [vmem:[#allocation7 + $0x4e0] sm:$0xff] }
  0xd4   :  { %v237_v25 = vmul.f32 %v215_v58, %v188_v13  ;;  %v239_v26 = vmul.f32 %v223_v60, %v188_v13  ;;  %v236_v61 = vmul.f32 %v211_v62, %v188_v13  ;;  %v161_v27 = vmul.f32 %v142_v2, %v112_v48  ;;  %v483_v62 = vld [vmem:[#allocation7 + $0x4f0] sm:$0xff]  ;;  %v482_v2 = vld [vmem:[#allocation7 + $0x4e8] sm:$0xff]  ;;  %v544_v48 = vld [vmem:[#allocation7 + $0x6d8] sm:$0xff] }
  0xd5   :  { %v241_v28 = vadd.f32 %v233_v21, %v156_v5  ;;  %v243_v29 = vadd.f32 %v235_v22, %v158_v6  ;;  %v240_v31 = vadd.f32 %v232_v23, %v155_v7  ;;  %v242_v33 = vadd.f32 %v234_v24, %v157_v9  ;;  %v477_v55 = vld [vmem:[#allocation7 + $0x4c0] sm:$0xff]  ;;  %v540_v58 = vld [vmem:[#allocation7 + $0x6b8] sm:$0xff]  ;;  %v539_v60 = vld [vmem:[#allocation7 + $0x6b0] sm:$0xff] }
  0xd6   :  { %v245_v34 = vadd.f32 %v237_v25, %v160_v10  ;;  %v247_v63 = vadd.f32 %v239_v26, %v162_v11  ;;  %v244_v35 = vadd.f32 %v236_v61, %v159_v12  ;;  %v238_v36 = vmul.f32 %v219_v3, %v188_v13  ;;  %v546_v3 = vld [vmem:[#allocation7 + $0x6e8] sm:$0xff]  ;;  %v473_v5 = vld [vmem:[#allocation7 + $0x4a0] sm:$0xff]  ;;  %v472_v7 = vld [vmem:[#allocation7 + $0x498] sm:$0xff] }
  0xd7   :  { %v318_v37 = vadd.f32 %v310_v14, %v241_v28  ;;  %v320_v38 = vadd.f32 %v312_v15, %v243_v29  ;;  %v317_v40 = vadd.f32 %v309_v16, %v240_v31  ;;  %v319_v50 = vadd.f32 %v311_v17, %v242_v33  ;;  %v537_v6 = vld [vmem:[#allocation7 + $0x6a0] sm:$0xff]  ;;  %v471_v9 = vld [vmem:[#allocation7 + $0x490] sm:$0xff]  ;;  %v470_v11 = vld [vmem:[#allocation7 + $0x488] sm:$0xff] }
  0xd8   :  { %v1522_v42 = vadd.f32 %v313_v20, %v244_v35  ;;  %v246_v52 = vadd.f32 %v238_v36, %v161_v27  ;;  %v315_v43 = vmul.f32 %v296_v4, %v265_v1  ;;  %v322_v53 = vadd.f32 %v314_v18, %v245_v34  ;;  %v542_v4 = vld [vmem:[#allocation7 + $0x6c8] sm:$0xff]  ;;  %v535_v10 = vld [vmem:[#allocation7 + $0x690] sm:$0xff]  ;;  %v469_v13 = vld [vmem:[#allocation7 + $0x480] sm:$0xff] }
  0xd9   :  { %657 = vmatprep.mubr.f32.mxu0 %v318_v37  ;;  %728 = vmatprep.mubr.f32.mxu1 %v320_v38  ;;  %v324_v44 = vadd.f32 %v316_v19, %v247_v63  ;;  %v538_v1 = vld [vmem:[#allocation7 + $0x6a8] sm:$0xff]  ;;  %v533_v14 = vld [vmem:[#allocation7 + $0x680] sm:$0xff]  ;;  %v468_v15 = vld [vmem:[#allocation7 + $0x478] sm:$0xff] }
  0xda   :  { %658 = vmatmul.mubr.f32.vlgmr.msra.gmra.mxu0 %v317_v40  ;;  %729 = vmatmul.mubr.f32.vlgmr.msra.gmra.mxu1 %v319_v50  ;;  %v1527_v46 = vadd.f32 %v315_v43, %v246_v52  ;;  %v534_v12 = vld [vmem:[#allocation7 + $0x688] sm:$0xff]  ;;  %v532_v16 = vld [vmem:[#allocation7 + $0x678] sm:$0xff]  ;;  %v467_v17 = vld [vmem:[#allocation7 + $0x470] sm:$0xff] }
  0xdb   :  { %736 = vmatpush1.msra.mxu0 %v483_v62  ;;  %807 = vmatpush1.msra.mxu1 %v547_v41  ;;  %v531_v18 = vld [vmem:[#allocation7 + $0x670] sm:$0xff]  ;;  %v466_v19 = vld [vmem:[#allocation7 + $0x468] sm:$0xff]  ;;  %v465_v21 = vld [vmem:[#allocation7 + $0x460] sm:$0xff] }
  0xdc   :  { %737 = vmatprep.subr.mxu0 %v482_v2  ;;  %799 = vmatprep.mubr.f32.mxu0 %v322_v53  ;;  %v530_v20 = vld [vmem:[#allocation7 + $0x668] sm:$0xff]  ;;  %v529_v22 = vld [vmem:[#allocation7 + $0x660] sm:$0xff]  ;;  %v464_v23 = vld [vmem:[#allocation7 + $0x458] sm:$0xff] }
  0xdd   :  { %808 = vmatprep.subr.mxu1 %v546_v3  ;;  %870 = vmatprep.mubr.f32.mxu1 %v324_v44  ;;  %v528_v24 = vld [vmem:[#allocation7 + $0x658] sm:$0xff]  ;;  %v463_v25 = vld [vmem:[#allocation7 + $0x450] sm:$0xff]  ;;  %v462_v61 = vld [vmem:[#allocation7 + $0x448] sm:$0xff] }
  0xde   :  { %738 = vmatpush1.msra.mxu0 %v481_v39  ;;  %809 = vmatpush1.msra.mxu1 %v545_v45  ;;  %v527_v26 = vld [vmem:[#allocation7 + $0x650] sm:$0xff]  ;;  %v526_v27 = vld [vmem:[#allocation7 + $0x648] sm:$0xff]  ;;  %v461_v28 = vld [vmem:[#allocation7 + $0x440] sm:$0xff] }
  0xdf   :  { %739 = vmatprep.subr.mxu0 %v480_v47  ;;  %810 = vmatprep.subr.mxu1 %v544_v48  ;;  %v525_v29 = vld [vmem:[#allocation7 + $0x640] sm:$0xff]  ;;  %v460_v31 = vld [vmem:[#allocation7 + $0x438] sm:$0xff]  ;;  %v459_v34 = vld [vmem:[#allocation7 + $0x430] sm:$0xff] }
  0xe0   :  { %740 = vmatpush1.msra.mxu0 %v479_v49  ;;  %811 = vmatpush1.msra.mxu1 %v543_v51  ;;  %v524_v33 = vld [vmem:[#allocation7 + $0x638] sm:$0xff]  ;;  %v523_v63 = vld [vmem:[#allocation7 + $0x630] sm:$0xff]  ;;  %v458_v35 = vld [vmem:[#allocation7 + $0x428] sm:$0xff] }
  0xe1   :  { %741 = vmatprep.subr.mxu0 %v478_v54  ;;  %812 = vmatprep.subr.mxu1 %v542_v4  ;;  %v522_v36 = vld [vmem:[#allocation7 + $0x628] sm:$0xff]  ;;  %v457_v37 = vld [vmem:[#allocation7 + $0x420] sm:$0xff]  ;;  %v456_v40 = vld [vmem:[#allocation7 + $0x418] sm:$0xff] }
  0xe2   :  { %742 = vmatpush1.msra.mxu0 %v477_v55  ;;  %813 = vmatpush1.msra.mxu1 %v541_v56  ;;  %v521_v38 = vld [vmem:[#allocation7 + $0x620] sm:$0xff]  ;;  %v520_v50 = vld [vmem:[#allocation7 + $0x618] sm:$0xff]  ;;  %v455_v62 = vld [vmem:[#allocation7 + $0x410] sm:$0xff] }
  0xe3   :  { %743 = vmatprep.subr.mxu0 %v476_v57  ;;  %814 = vmatprep.subr.mxu1 %v540_v58  ;;  %v519_v41 = vld [vmem:[#allocation7 + $0x610] sm:$0xff]  ;;  %v454_v52 = vld [vmem:[#allocation7 + $0x408] sm:$0xff]  ;;  %v453_v43 = vld [vmem:[#allocation7 + $0x400] sm:$0xff] }
  0xe4   :  { %744 = vmatpush1.msra.mxu0 %v475_v59  ;;  %815 = vmatpush1.msra.mxu1 %v539_v60  ;;  %v518_v2 = vld [vmem:[#allocation7 + $0x608] sm:$0xff]  ;;  %v517_v53 = vld [vmem:[#allocation7 + $0x600] sm:$0xff]  ;;  %v516_v3 = vld [vmem:[#allocation7 + $0x5f8] sm:$0xff] }
  0xe5   :  { %745 = vmatprep.subr.mxu0 %v474_v0  ;;  %816 = vmatprep.subr.mxu1 %v538_v1  ;;  %v580_v44 = vld [vmem:[#allocation7 + $0x7f8] sm:$0xff]  ;;  %v515_v39 = vld [vmem:[#allocation7 + $0x5f0] sm:$0xff]  ;;  %v514_v47 = vld [vmem:[#allocation7 + $0x5e8] sm:$0xff] }
  0xe6   :  { %746 = vmatpush1.msra.mxu0 %v473_v5  ;;  %817 = vmatpush1.msra.mxu1 %v537_v6  ;;  %v579_v45 = vld [vmem:[#allocation7 + $0x7f0] sm:$0xff]  ;;  %v578_v48 = vld [vmem:[#allocation7 + $0x7e8] sm:$0xff]  ;;  %v513_v49 = vld [vmem:[#allocation7 + $0x5e0] sm:$0xff] }
  0xe7   :  { %747 = vmatprep.subr.mxu0 %v472_v7  ;;  %818 = vmatprep.subr.mxu1 %v536_v8  ;;  %v577_v51 = vld [vmem:[#allocation7 + $0x7e0] sm:$0xff]  ;;  %v512_v54 = vld [vmem:[#allocation7 + $0x5d8] sm:$0xff]  ;;  %v511_v55 = vld [vmem:[#allocation7 + $0x5d0] sm:$0xff] }
  0xe8   :  { %748 = vmatpush1.msra.mxu0 %v471_v9  ;;  %819 = vmatpush1.msra.mxu1 %v535_v10  ;;  %v576_v4 = vld [vmem:[#allocation7 + $0x7d8] sm:$0xff]  ;;  %v575_v56 = vld [vmem:[#allocation7 + $0x7d0] sm:$0xff]  ;;  %v510_v57 = vld [vmem:[#allocation7 + $0x5c8] sm:$0xff] }
  0xe9   :  { %749 = vmatprep.subr.mxu0 %v470_v11  ;;  %820 = vmatprep.subr.mxu1 %v534_v12  ;;  %v574_v58 = vld [vmem:[#allocation7 + $0x7c8] sm:$0xff]  ;;  %v509_v59 = vld [vmem:[#allocation7 + $0x5c0] sm:$0xff]  ;;  %v508_v0 = vld [vmem:[#allocation7 + $0x5b8] sm:$0xff] }
  0xea   :  { %750 = vmatpush1.msra.mxu0 %v469_v13  ;;  %821 = vmatpush1.msra.mxu1 %v533_v14  ;;  %v573_v60 = vld [vmem:[#allocation7 + $0x7c0] sm:$0xff]  ;;  %v572_v1 = vld [vmem:[#allocation7 + $0x7b8] sm:$0xff]  ;;  %v507_v5 = vld [vmem:[#allocation7 + $0x5b0] sm:$0xff] }
  0xeb   :  { %751 = vmatprep.subr.mxu0 %v468_v15  ;;  %822 = vmatprep.subr.mxu1 %v532_v16  ;;  %v571_v6 = vld [vmem:[#allocation7 + $0x7b0] sm:$0xff]  ;;  %v506_v7 = vld [vmem:[#allocation7 + $0x5a8] sm:$0xff]  ;;  %v505_v9 = vld [vmem:[#allocation7 + $0x5a0] sm:$0xff] }
  0xec   :  { %752 = vmatpush1.msra.mxu0 %v467_v17  ;;  %823 = vmatpush1.msra.mxu1 %v531_v18  ;;  %v570_v8 = vld [vmem:[#allocation7 + $0x7a8] sm:$0xff]  ;;  %v569_v10 = vld [vmem:[#allocation7 + $0x7a0] sm:$0xff]  ;;  %v504_v11 = vld [vmem:[#allocation7 + $0x598] sm:$0xff] }
  0xed   :  { %753 = vmatprep.subr.mxu0 %v466_v19  ;;  %824 = vmatprep.subr.mxu1 %v530_v20  ;;  %v568_v12 = vld [vmem:[#allocation7 + $0x798] sm:$0xff]  ;;  %v503_v13 = vld [vmem:[#allocation7 + $0x590] sm:$0xff]  ;;  %v502_v15 = vld [vmem:[#allocation7 + $0x588] sm:$0xff] }
  0xee   :  { %754 = vmatpush1.msra.mxu0 %v465_v21  ;;  %825 = vmatpush1.msra.mxu1 %v529_v22  ;;  %v567_v14 = vld [vmem:[#allocation7 + $0x790] sm:$0xff]  ;;  %v566_v16 = vld [vmem:[#allocation7 + $0x788] sm:$0xff]  ;;  %v501_v17 = vld [vmem:[#allocation7 + $0x580] sm:$0xff] }
  0xef   :  { %755 = vmatprep.subr.mxu0 %v464_v23  ;;  %826 = vmatprep.subr.mxu1 %v528_v24  ;;  %v565_v18 = vld [vmem:[#allocation7 + $0x780] sm:$0xff]  ;;  %v500_v19 = vld [vmem:[#allocation7 + $0x578] sm:$0xff]  ;;  %v499_v21 = vld [vmem:[#allocation7 + $0x570] sm:$0xff] }
  0xf0   :  { %756 = vmatpush1.msra.mxu0 %v463_v25  ;;  %827 = vmatpush1.msra.mxu1 %v527_v26  ;;  %v564_v20 = vld [vmem:[#allocation7 + $0x778] sm:$0xff]  ;;  %v563_v22 = vld [vmem:[#allocation7 + $0x770] sm:$0xff]  ;;  %v498_v23 = vld [vmem:[#allocation7 + $0x568] sm:$0xff] }
  0xf1   :  { %757 = vmatprep.subr.mxu0 %v462_v61  ;;  %828 = vmatprep.subr.mxu1 %v526_v27  ;;  %v562_v24 = vld [vmem:[#allocation7 + $0x768] sm:$0xff]  ;;  %v497_v25 = vld [vmem:[#allocation7 + $0x560] sm:$0xff]  ;;  %v496_v61 = vld [vmem:[#allocation7 + $0x558] sm:$0xff] }
  0xf2   :  { %758 = vmatpush1.msra.mxu0 %v461_v28  ;;  %829 = vmatpush1.msra.mxu1 %v525_v29  ;;  %v561_v26 = vld [vmem:[#allocation7 + $0x760] sm:$0xff]  ;;  %v560_v27 = vld [vmem:[#allocation7 + $0x758] sm:$0xff]  ;;  %v495_v28 = vld [vmem:[#allocation7 + $0x550] sm:$0xff] }
  0xf3   :  { %759 = vmatprep.subr.mxu0 %v460_v31  ;;  %830 = vmatprep.subr.mxu1 %v524_v33  ;;  %v559_v29 = vld [vmem:[#allocation7 + $0x750] sm:$0xff]  ;;  %v494_v31 = vld [vmem:[#allocation7 + $0x548] sm:$0xff] }
  0xf4   :  { %760 = vmatpush1.msra.mxu0 %v459_v34  ;;  %831 = vmatpush1.msra.mxu1 %v523_v63  ;;  %v558_v33 = vld [vmem:[#allocation7 + $0x748] sm:$0xff]  ;;  %v493_v34 = vld [vmem:[#allocation7 + $0x540] sm:$0xff] }
  0xf5   :  { %761 = vmatprep.subr.mxu0 %v458_v35  ;;  %832 = vmatprep.subr.mxu1 %v522_v36  ;;  %v557_v63 = vld [vmem:[#allocation7 + $0x740] sm:$0xff]  ;;  %v492_v35 = vld [vmem:[#allocation7 + $0x538] sm:$0xff] }
  0xf6   :  { %762 = vmatpush1.msra.mxu0 %v457_v37  ;;  %833 = vmatpush1.msra.mxu1 %v521_v38  ;;  %v556_v36 = vld [vmem:[#allocation7 + $0x738] sm:$0xff]  ;;  %v491_v37 = vld [vmem:[#allocation7 + $0x530] sm:$0xff] }
  0xf7   :  { %763 = vmatprep.subr.mxu0 %v456_v40  ;;  %834 = vmatprep.subr.mxu1 %v520_v50  ;;  %v555_v38 = vld [vmem:[#allocation7 + $0x730] sm:$0xff]  ;;  %v490_v40 = vld [vmem:[#allocation7 + $0x528] sm:$0xff] }
  0xf8   :  { %764 = vmatpush1.msra.mxu0 %v455_v62  ;;  %835 = vmatpush1.msra.mxu1 %v519_v41  ;;  %v554_v50 = vld [vmem:[#allocation7 + $0x728] sm:$0xff]  ;;  %v489_v62 = vld [vmem:[#allocation7 + $0x520] sm:$0xff] }
  0xf9   :  { %765 = vmatprep.subr.mxu0 %v454_v52  ;;  %836 = vmatprep.subr.mxu1 %v518_v2  ;;  %v553_v41 = vld [vmem:[#allocation7 + $0x720] sm:$0xff]  ;;  %v488_v52 = vld [vmem:[#allocation7 + $0x518] sm:$0xff] }
  0xfa   :  { %766 = vmatpush1.msra.mxu0 %v453_v43  ;;  %837 = vmatpush1.msra.mxu1 %v517_v53  ;;  %v552_v2 = vld [vmem:[#allocation7 + $0x718] sm:$0xff]  ;;  %v487_v43 = vld [vmem:[#allocation7 + $0x510] sm:$0xff] }
  0xfb   :  { %767 = vmatprep.subr.mxu0 %v516_v3  ;;  %838 = vmatprep.subr.mxu1 %v580_v44  ;;  %v551_v53 = vld [vmem:[#allocation7 + $0x710] sm:$0xff]  ;;  %v486_v3 = vld [vmem:[#allocation7 + $0x508] sm:$0xff] }
  0xfc   :  { %768 = vmatpush2.msra.mxu0 %v515_v39  ;;  %839 = vmatpush2.msra.mxu1 %v579_v45  ;;  %v550_v44 = vld [vmem:[#allocation7 + $0x708] sm:$0xff]  ;;  %v485_v39 = vld [vmem:[#allocation7 + $0x500] sm:$0xff] }
  0xfd   :  { %769 = vmatprep.subr.mxu0 %v514_v47  ;;  %840 = vmatprep.subr.mxu1 %v578_v48  ;;  %v549_v45 = vld [vmem:[#allocation7 + $0x700] sm:$0xff]  ;;  %v914_v47 = vld [vmem:[#allocation8 + $0xf8] sm:$0xff]  ;;  %v913_v48 = vld [vmem:[#allocation8 + $0xf0] sm:$0xff] }
  0xfe   :  { %770 = vmatpush2.msra.mxu0 %v513_v49  ;;  %841 = vmatpush2.msra.mxu1 %v577_v51  ;;  %v912_v49 = vld [vmem:[#allocation8 + $0xe8] sm:$0xff]  ;;  %v911_v51 = vld [vmem:[#allocation8 + $0xe0] sm:$0xff] }
  0xff   :  { %771 = vmatprep.subr.mxu0 %v512_v54  ;;  %842 = vmatprep.subr.mxu1 %v576_v4  ;;  %v910_v54 = vld [vmem:[#allocation8 + $0xd8] sm:$0xff]  ;;  %v909_v4 = vld [vmem:[#allocation8 + $0xd0] sm:$0xff] }
 0x100   :  { %772 = vmatpush2.msra.mxu0 %v511_v55  ;;  %843 = vmatpush2.msra.mxu1 %v575_v56  ;;  %v908_v55 = vld [vmem:[#allocation8 + $0xc8] sm:$0xff]  ;;  %v907_v56 = vld [vmem:[#allocation8 + $0xc0] sm:$0xff] }
 0x101   :  { %773 = vmatprep.subr.mxu0 %v510_v57  ;;  %844 = vmatprep.subr.mxu1 %v574_v58  ;;  %v906_v57 = vld [vmem:[#allocation8 + $0xb8] sm:$0xff]  ;;  %v905_v58 = vld [vmem:[#allocation8 + $0xb0] sm:$0xff] }
 0x102   :  { %774 = vmatpush2.msra.mxu0 %v509_v59  ;;  %845 = vmatpush2.msra.mxu1 %v573_v60  ;;  %v902_v59 = vld [vmem:[#allocation8 + $0x98] sm:$0xff]  ;;  %v901_v60 = vld [vmem:[#allocation8 + $0x90] sm:$0xff] }
 0x103   :  { %775 = vmatprep.subr.mxu0 %v508_v0  ;;  %846 = vmatprep.subr.mxu1 %v572_v1  ;;  %v900_v0 = vld [vmem:[#allocation8 + $0x88] sm:$0xff]  ;;  %v899_v1 = vld [vmem:[#allocation8 + $0x80] sm:$0xff] }
 0x104   :  { %776 = vmatpush2.msra.mxu0 %v507_v5  ;;  %847 = vmatpush2.msra.mxu1 %v571_v6  ;;  %v898_v5 = vld [vmem:[#allocation8 + $0x78] sm:$0xff]  ;;  %v897_v6 = vld [vmem:[#allocation8 + $0x70] sm:$0xff] }
 0x105   :  { %777 = vmatprep.subr.mxu0 %v506_v7  ;;  %848 = vmatprep.subr.mxu1 %v570_v8  ;;  %v896_v7 = vld [vmem:[#allocation8 + $0x68] sm:$0xff]  ;;  %v895_v8 = vld [vmem:[#allocation8 + $0x60] sm:$0xff] }
 0x106   :  { %778 = vmatpush2.msra.mxu0 %v505_v9  ;;  %849 = vmatpush2.msra.mxu1 %v569_v10  ;;  %v894_v9 = vld [vmem:[#allocation8 + $0x58] sm:$0xff]  ;;  %v893_v10 = vld [vmem:[#allocation8 + $0x50] sm:$0xff] }
 0x107   :  { %779 = vmatprep.subr.mxu0 %v504_v11  ;;  %850 = vmatprep.subr.mxu1 %v568_v12  ;;  %v892_v11 = vld [vmem:[#allocation8 + $0x48] sm:$0xff]  ;;  %v891_v12 = vld [vmem:[#allocation8 + $0x40] sm:$0xff] }
 0x108   :  { %780 = vmatpush2.msra.mxu0 %v503_v13  ;;  %851 = vmatpush2.msra.mxu1 %v567_v14  ;;  %v890_v13 = vld [vmem:[#allocation8 + $0x38] sm:$0xff]  ;;  %v889_v14 = vld [vmem:[#allocation8 + $0x30] sm:$0xff] }
 0x109   :  { %781 = vmatprep.subr.mxu0 %v502_v15  ;;  %852 = vmatprep.subr.mxu1 %v566_v16  ;;  %v888_v15 = vld [vmem:[#allocation8 + $0x28] sm:$0xff]  ;;  %v887_v16 = vld [vmem:[#allocation8 + $0x20] sm:$0xff] }
 0x10a   :  { %782 = vmatpush2.msra.mxu0 %v501_v17  ;;  %853 = vmatpush2.msra.mxu1 %v565_v18  ;;  %v886_v17 = vld [vmem:[#allocation8 + $0x18] sm:$0xff]  ;;  %v885_v18 = vld [vmem:[#allocation8 + $0x10] sm:$0xff] }
 0x10b   :  { %783 = vmatprep.subr.mxu0 %v500_v19  ;;  %854 = vmatprep.subr.mxu1 %v564_v20  ;;  %v884_v19 = vld [vmem:[#allocation8 + $0x8] sm:$0xff]  ;;  %v883_v20 = vld [vmem:[#allocation8] sm:$0xff] }
 0x10c   :  { %784 = vmatpush2.msra.mxu0 %v499_v21  ;;  %855 = vmatpush2.msra.mxu1 %v563_v22  ;;  %v946_v21 = vld [vmem:[#allocation8 + $0x1f8] sm:$0xff]  ;;  %v945_v22 = vld [vmem:[#allocation8 + $0x1f0] sm:$0xff] }
 0x10d   :  { %785 = vmatprep.subr.mxu0 %v498_v23  ;;  %856 = vmatprep.subr.mxu1 %v562_v24  ;;  %v944_v23 = vld [vmem:[#allocation8 + $0x1e8] sm:$0xff]  ;;  %v943_v24 = vld [vmem:[#allocation8 + $0x1e0] sm:$0xff] }
 0x10e   :  { %786 = vmatpush2.msra.mxu0 %v497_v25  ;;  %857 = vmatpush2.msra.mxu1 %v561_v26  ;;  %v942_v25 = vld [vmem:[#allocation8 + $0x1d8] sm:$0xff]  ;;  %v941_v26 = vld [vmem:[#allocation8 + $0x1d0] sm:$0xff] }
 0x10f   :  { %787 = vmatprep.subr.mxu0 %v496_v61  ;;  %858 = vmatprep.subr.mxu1 %v560_v27  ;;  %v940_v61 = vld [vmem:[#allocation8 + $0x1c8] sm:$0xff]  ;;  %v939_v27 = vld [vmem:[#allocation8 + $0x1c0] sm:$0xff] }
 0x110   :  { %788 = vmatpush2.msra.mxu0 %v495_v28  ;;  %859 = vmatpush2.msra.mxu1 %v559_v29  ;;  %v938_v28 = vld [vmem:[#allocation8 + $0x1b8] sm:$0xff]  ;;  %v937_v29 = vld [vmem:[#allocation8 + $0x1b0] sm:$0xff] }
 0x111   :  { %789 = vmatprep.subr.mxu0 %v494_v31  ;;  %860 = vmatprep.subr.mxu1 %v558_v33  ;;  %v936_v31 = vld [vmem:[#allocation8 + $0x1a8] sm:$0xff]  ;;  %v935_v33 = vld [vmem:[#allocation8 + $0x1a0] sm:$0xff] }
 0x112   :  { %790 = vmatpush2.msra.mxu0 %v493_v34  ;;  %861 = vmatpush2.msra.mxu1 %v557_v63  ;;  %v934_v34 = vld [vmem:[#allocation8 + $0x198] sm:$0xff]  ;;  %v933_v63 = vld [vmem:[#allocation8 + $0x190] sm:$0xff] }
 0x113   :  { %791 = vmatprep.subr.mxu0 %v492_v35  ;;  %862 = vmatprep.subr.mxu1 %v556_v36  ;;  %v932_v35 = vld [vmem:[#allocation8 + $0x188] sm:$0xff]  ;;  %v931_v36 = vld [vmem:[#allocation8 + $0x180] sm:$0xff] }
 0x114   :  { %792 = vmatpush2.msra.mxu0 %v491_v37  ;;  %863 = vmatpush2.msra.mxu1 %v555_v38  ;;  %v930_v37 = vld [vmem:[#allocation8 + $0x178] sm:$0xff]  ;;  %v929_v38 = vld [vmem:[#allocation8 + $0x170] sm:$0xff] }
 0x115   :  { %793 = vmatprep.subr.mxu0 %v490_v40  ;;  %864 = vmatprep.subr.mxu1 %v554_v50  ;;  %v928_v40 = vld [vmem:[#allocation8 + $0x168] sm:$0xff]  ;;  %v927_v50 = vld [vmem:[#allocation8 + $0x160] sm:$0xff] }
 0x116   :  { %794 = vmatpush2.msra.mxu0 %v489_v62  ;;  %865 = vmatpush2.msra.mxu1 %v553_v41  ;;  %v926_v62 = vld [vmem:[#allocation8 + $0x158] sm:$0xff]  ;;  %v925_v41 = vld [vmem:[#allocation8 + $0x150] sm:$0xff] }
 0x117   :  { %795 = vmatprep.subr.mxu0 %v488_v52  ;;  %866 = vmatprep.subr.mxu1 %v552_v2  ;;  %v924_v52 = vld [vmem:[#allocation8 + $0x148] sm:$0xff]  ;;  %v923_v2 = vld [vmem:[#allocation8 + $0x140] sm:$0xff] }
 0x118   :  { %796 = vmatpush2.msra.mxu0 %v487_v43  ;;  %867 = vmatpush2.msra.mxu1 %v551_v53  ;;  %v922_v43 = vld [vmem:[#allocation8 + $0x138] sm:$0xff]  ;;  %v921_v53 = vld [vmem:[#allocation8 + $0x130] sm:$0xff] }
 0x119   :  { %797 = vmatprep.subr.mxu0 %v486_v3  ;;  %868 = vmatprep.subr.mxu1 %v550_v44  ;;  %v920_v3 = vld [vmem:[#allocation8 + $0x128] sm:$0xff]  ;;  %v919_v44 = vld [vmem:[#allocation8 + $0x120] sm:$0xff] }
 0x11a   :  { %798 = vmatpush2.msra.mxu0 %v485_v39  ;;  %869 = vmatpush2.msra.mxu1 %v549_v45  ;;  %v918_v39 = vld [vmem:[#allocation8 + $0x118] sm:$0xff]  ;;  %v917_v45 = vld [vmem:[#allocation8 + $0x110] sm:$0xff] }
 0x11b   :  { %800 = vmatmul.mubr.f32.vlgmr.msra.gmra.mxu0 %v1522_v42  ;;  %871 = vmatmul.mubr.f32.vlgmr.msra.gmra.mxu1 %v1527_v46  ;;  %v904_v42 = vld [vmem:[#allocation8 + $0xa8] sm:$0xff]  ;;  %v903_v46 = vld [vmem:[#allocation8 + $0xa0] sm:$0xff] }
 0x11c   :  { %959 = vmatprep.subr.mxu0 %v914_v47  ;;  %v916_v47 = vld [vmem:[#allocation8 + $0x108] sm:$0xff] }
 0x11d   :  { %960 = vmatpush1.msra.mxu0 %v913_v48  ;;  %v915_v48 = vld [vmem:[#allocation8 + $0x100] sm:$0xff] }
 0x11e   :  { %961 = vmatprep.subr.mxu0 %v912_v49  ;;  %v1067_v49 = vld [vmem:[#allocation10 + $0xf8] sm:$0xff] }
 0x11f   :  { %962 = vmatpush1.msra.mxu0 %v911_v51  ;;  %v1066_v51 = vld [vmem:[#allocation10 + $0xf0] sm:$0xff]  ;;  %1112 = vmatprep.subr.mxu1 %v1067_v49 }
 0x120   :  { %963 = vmatprep.subr.mxu0 %v910_v54  ;;  %v1065_v54 = vld [vmem:[#allocation10 + $0xe8] sm:$0xff]  ;;  %1113 = vmatpush1.msra.mxu1 %v1066_v51 }
 0x121   :  { %964 = vmatpush1.msra.mxu0 %v909_v4  ;;  %v1064_v4 = vld [vmem:[#allocation10 + $0xe0] sm:$0xff]  ;;  %1114 = vmatprep.subr.mxu1 %v1065_v54 }
 0x122   :  { %965 = vmatprep.subr.mxu0 %v908_v55  ;;  %v1063_v55 = vld [vmem:[#allocation10 + $0xd8] sm:$0xff]  ;;  %1115 = vmatpush1.msra.mxu1 %v1064_v4 }
 0x123   :  { %966 = vmatpush1.msra.mxu0 %v907_v56  ;;  %v1062_v56 = vld [vmem:[#allocation10 + $0xd0] sm:$0xff]  ;;  %1116 = vmatprep.subr.mxu1 %v1063_v55 }
 0x124   :  { %967 = vmatprep.subr.mxu0 %v906_v57  ;;  %v1061_v57 = vld [vmem:[#allocation10 + $0xc8] sm:$0xff]  ;;  %1117 = vmatpush1.msra.mxu1 %v1062_v56 }
 0x125   :  { %968 = vmatpush1.msra.mxu0 %v905_v58  ;;  %v1060_v58 = vld [vmem:[#allocation10 + $0xc0] sm:$0xff]  ;;  %1118 = vmatprep.subr.mxu1 %v1061_v57 }
 0x126   :  { %969 = vmatprep.subr.mxu0 %v904_v42  ;;  %v1059_v42 = vld [vmem:[#allocation10 + $0xb8] sm:$0xff]  ;;  %1119 = vmatpush1.msra.mxu1 %v1060_v58 }
 0x127   :  { %970 = vmatpush1.msra.mxu0 %v903_v46  ;;  %v1058_v46 = vld [vmem:[#allocation10 + $0xb0] sm:$0xff]  ;;  %1120 = vmatprep.subr.mxu1 %v1059_v42 }
 0x128   :  { %971 = vmatprep.subr.mxu0 %v902_v59  ;;  %v1057_v59 = vld [vmem:[#allocation10 + $0xa8] sm:$0xff]  ;;  %1121 = vmatpush1.msra.mxu1 %v1058_v46 }
 0x129   :  { %972 = vmatpush1.msra.mxu0 %v901_v60  ;;  %v1056_v60 = vld [vmem:[#allocation10 + $0xa0] sm:$0xff]  ;;  %1122 = vmatprep.subr.mxu1 %v1057_v59 }
 0x12a   :  { %973 = vmatprep.subr.mxu0 %v900_v0  ;;  %v1055_v0 = vld [vmem:[#allocation10 + $0x98] sm:$0xff]  ;;  %1123 = vmatpush1.msra.mxu1 %v1056_v60 }
 0x12b   :  { %974 = vmatpush1.msra.mxu0 %v899_v1  ;;  %v1054_v1 = vld [vmem:[#allocation10 + $0x90] sm:$0xff]  ;;  %1124 = vmatprep.subr.mxu1 %v1055_v0 }
 0x12c   :  { %975 = vmatprep.subr.mxu0 %v898_v5  ;;  %v1053_v5 = vld [vmem:[#allocation10 + $0x88] sm:$0xff]  ;;  %1125 = vmatpush1.msra.mxu1 %v1054_v1 }
 0x12d   :  { %976 = vmatpush1.msra.mxu0 %v897_v6  ;;  %v1052_v6 = vld [vmem:[#allocation10 + $0x80] sm:$0xff]  ;;  %1126 = vmatprep.subr.mxu1 %v1053_v5 }
 0x12e   :  { %977 = vmatprep.subr.mxu0 %v896_v7  ;;  %v1051_v7 = vld [vmem:[#allocation10 + $0x78] sm:$0xff]  ;;  %1127 = vmatpush1.msra.mxu1 %v1052_v6 }
 0x12f   :  { %978 = vmatpush1.msra.mxu0 %v895_v8  ;;  %v1050_v8 = vld [vmem:[#allocation10 + $0x70] sm:$0xff]  ;;  %1128 = vmatprep.subr.mxu1 %v1051_v7  ;;  %v1076_v7 = vld [vmem:[#allocation10 + $0x140] sm:$0xff] }
 0x130   :  { %979 = vmatprep.subr.mxu0 %v894_v9  ;;  %v1049_v9 = vld [vmem:[#allocation10 + $0x68] sm:$0xff]  ;;  %1129 = vmatpush1.msra.mxu1 %v1050_v8  ;;  %v1075_v8 = vld [vmem:[#allocation10 + $0x138] sm:$0xff] }
 0x131   :  { %980 = vmatpush1.msra.mxu0 %v893_v10  ;;  %v1048_v10 = vld [vmem:[#allocation10 + $0x60] sm:$0xff]  ;;  %1130 = vmatprep.subr.mxu1 %v1049_v9  ;;  %v1074_v9 = vld [vmem:[#allocation10 + $0x130] sm:$0xff] }
 0x132   :  { %981 = vmatprep.subr.mxu0 %v892_v11  ;;  %v1047_v11 = vld [vmem:[#allocation10 + $0x58] sm:$0xff]  ;;  %1131 = vmatpush1.msra.mxu1 %v1048_v10  ;;  %v1073_v10 = vld [vmem:[#allocation10 + $0x128] sm:$0xff] }
 0x133   :  { %982 = vmatpush1.msra.mxu0 %v891_v12  ;;  %v1046_v12 = vld [vmem:[#allocation10 + $0x50] sm:$0xff]  ;;  %1132 = vmatprep.subr.mxu1 %v1047_v11  ;;  %v1072_v11 = vld [vmem:[#allocation10 + $0x120] sm:$0xff] }
 0x134   :  { %983 = vmatprep.subr.mxu0 %v890_v13  ;;  %v1045_v13 = vld [vmem:[#allocation10 + $0x48] sm:$0xff]  ;;  %1133 = vmatpush1.msra.mxu1 %v1046_v12  ;;  %v1071_v12 = vld [vmem:[#allocation10 + $0x118] sm:$0xff] }
 0x135   :  { %984 = vmatpush1.msra.mxu0 %v889_v14  ;;  %v1044_v14 = vld [vmem:[#allocation10 + $0x40] sm:$0xff]  ;;  %1134 = vmatprep.subr.mxu1 %v1045_v13  ;;  %v1070_v13 = vld [vmem:[#allocation10 + $0x110] sm:$0xff] }
 0x136   :  { %985 = vmatprep.subr.mxu0 %v888_v15  ;;  %v1043_v15 = vld [vmem:[#allocation10 + $0x38] sm:$0xff]  ;;  %1135 = vmatpush1.msra.mxu1 %v1044_v14  ;;  %v1069_v14 = vld [vmem:[#allocation10 + $0x108] sm:$0xff] }
 0x137   :  { %986 = vmatpush1.msra.mxu0 %v887_v16  ;;  %v1042_v16 = vld [vmem:[#allocation10 + $0x30] sm:$0xff]  ;;  %1136 = vmatprep.subr.mxu1 %v1043_v15  ;;  %v1068_v15 = vld [vmem:[#allocation10 + $0x100] sm:$0xff] }
 0x138   :  { %987 = vmatprep.subr.mxu0 %v886_v17  ;;  %v1041_v17 = vld [vmem:[#allocation10 + $0x28] sm:$0xff]  ;;  %1137 = vmatpush1.msra.mxu1 %v1042_v16  ;;  %v947_v16 = vld [vmem:[%s1556_s5] sm:$0x3]  ;;  %s1371_s5 = smov [#allocation11]  }
 0x139   :  { %988 = vmatpush1.msra.mxu0 %v885_v18  ;;  %v1040_v18 = vld [vmem:[#allocation10 + $0x20] sm:$0xff]  ;;  %1138 = vmatprep.subr.mxu1 %v1041_v17  ;;  %v952_v17 = vrot.slane %v947_v16, %v1478_v32 }
 0x13a   :  { %989 = vmatprep.subr.mxu0 %v884_v19  ;;  %v1039_v19 = vld [vmem:[#allocation10 + $0x18] sm:$0xff]  ;;  %1139 = vmatpush1.msra.mxu1 %v1040_v18  ;;  %v956_v18 = vrot.slane %v947_v16, %v1474_v30 }
 0x13b   :  { %990 = vmatpush1.msra.mxu0 %v883_v20  ;;  %v1038_v20 = vld [vmem:[#allocation10 + $0x10] sm:$0xff]  ;;  %1140 = vmatprep.subr.mxu1 %v1039_v19 }
 0x13c   :  { %991 = vmatprep.subr.mxu0 %v946_v21  ;;  %v1037_v21 = vld [vmem:[#allocation10 + $0x8] sm:$0xff]  ;;  %1141 = vmatpush1.msra.mxu1 %v1038_v20 }
 0x13d   :  { %992 = vmatpush2.msra.mxu0 %v945_v22  ;;  %v1036_v22 = vld [vmem:[#allocation10] sm:$0xff]  ;;  %1142 = vmatprep.subr.mxu1 %v1037_v21 }
 0x13e   :  { %993 = vmatprep.subr.mxu0 %v944_v23  ;;  %v1099_v23 = vld [vmem:[#allocation10 + $0x1f8] sm:$0xff]  ;;  %1143 = vmatpush1.msra.mxu1 %v1036_v22 }
 0x13f   :  { %994 = vmatpush2.msra.mxu0 %v943_v24  ;;  %v1098_v24 = vld [vmem:[#allocation10 + $0x1f0] sm:$0xff]  ;;  %1144 = vmatprep.subr.mxu1 %v1099_v23 }
 0x140   :  { %995 = vmatprep.subr.mxu0 %v942_v25  ;;  %v1097_v25 = vld [vmem:[#allocation10 + $0x1e8] sm:$0xff]  ;;  %1145 = vmatpush2.msra.mxu1 %v1098_v24 }
 0x141   :  { %996 = vmatpush2.msra.mxu0 %v941_v26  ;;  %v1096_v26 = vld [vmem:[#allocation10 + $0x1e0] sm:$0xff]  ;;  %1146 = vmatprep.subr.mxu1 %v1097_v25 }
 0x142   :  { %997 = vmatprep.subr.mxu0 %v940_v61  ;;  %v1095_v61 = vld [vmem:[#allocation10 + $0x1d8] sm:$0xff]  ;;  %1147 = vmatpush2.msra.mxu1 %v1096_v26 }
 0x143   :  { %998 = vmatpush2.msra.mxu0 %v939_v27  ;;  %v1094_v27 = vld [vmem:[#allocation10 + $0x1d0] sm:$0xff]  ;;  %1148 = vmatprep.subr.mxu1 %v1095_v61 }
 0x144   :  { %999 = vmatprep.subr.mxu0 %v938_v28  ;;  %v1093_v28 = vld [vmem:[#allocation10 + $0x1c8] sm:$0xff]  ;;  %1149 = vmatpush2.msra.mxu1 %v1094_v27  ;;  %v1100_v61 = vld [vmem:[%s1558_s7] sm:$0x3]  ;;  %s1211_s7 = sshll.u32 %s1371_s5, 4  ;;  %s1212_s7 = int_to_ptr.vmem [resolvable:$true] %s1211_s7 }
 0x145   :  { %1000 = vmatpush2.msra.mxu0 %v937_v29  ;;  %v1092_v29 = vld [vmem:[#allocation10 + $0x1c0] sm:$0xff]  ;;  %1150 = vmatprep.subr.mxu1 %v1093_v28  ;;  %v1105_v27 = vrot.slane %v1100_v61, %v1478_v32  ;;  %v1109_v28 = vrot.slane %v1100_v61, %v1474_v30  ;;  %s1336_s10 = scalar_lea.vmem %s1212_s7, 64  ;;  %p1341_p12 = scmp.lt.s32.totalorder %s1212_s7, %s1212_s7 }
 0x146   :  { %1001 = vmatprep.subr.mxu0 %v936_v31  ;;  %v1091_v31 = vld [vmem:[#allocation10 + $0x1b8] sm:$0xff]  ;;  %1151 = vmatpush2.msra.mxu1 %v1092_v29  ;;  %p1337_p11 = scmp.ne.s32.totalorder %s1212_s7, %s1336_s10  ;;  %p1342_p13 = scmp.lt.s32.totalorder %s1336_s10, %s1336_s10 }
 0x147   :  { %1002 = vmatpush2.msra.mxu0 %v935_v33  ;;  %v1090_v33 = vld [vmem:[#allocation10 + $0x1b0] sm:$0xff]  ;;  %1152 = vmatprep.subr.mxu1 %v1091_v31 }
 0x148   :  { %1003 = vmatprep.subr.mxu0 %v934_v34  ;;  %v1089_v34 = vld [vmem:[#allocation10 + $0x1a8] sm:$0xff]  ;;  %1153 = vmatpush2.msra.mxu1 %v1090_v33  ;;  %p1343_p0 = por %p1342_p13, %p1341_p12 }
 0x149   :  { %1004 = vmatpush2.msra.mxu0 %v933_v63  ;;  %v1088_v63 = vld [vmem:[#allocation10 + $0x1a0] sm:$0xff]  ;;  %1154 = vmatprep.subr.mxu1 %v1089_v34 }
 0x14a   :  { %1005 = vmatprep.subr.mxu0 %v932_v35  ;;  %v1087_v35 = vld [vmem:[#allocation10 + $0x198] sm:$0xff]  ;;  %1155 = vmatpush2.msra.mxu1 %v1088_v63  ;;  %p1344_p1 = pnand %p1343_p0, %p1337_p11 }
 0x14b   :  { %1006 = vmatpush2.msra.mxu0 %v931_v36  ;;  %v1086_v36 = vld [vmem:[#allocation10 + $0x190] sm:$0xff]  ;;  %1156 = vmatprep.subr.mxu1 %v1087_v35 }
 0x14c   :  { %1007 = vmatprep.subr.mxu0 %v930_v37  ;;  %v1085_v37 = vld [vmem:[#allocation10 + $0x188] sm:$0xff]  ;;  %1157 = vmatpush2.msra.mxu1 %v1086_v36 }
 0x14d   :  { %1008 = vmatpush2.msra.mxu0 %v929_v38  ;;  %v1084_v38 = vld [vmem:[#allocation10 + $0x180] sm:$0xff]  ;;  %1158 = vmatprep.subr.mxu1 %v1085_v37 }
 0x14e   :  { %1009 = vmatprep.subr.mxu0 %v928_v40  ;;  %v1083_v40 = vld [vmem:[#allocation10 + $0x178] sm:$0xff]  ;;  %1159 = vmatpush2.msra.mxu1 %v1084_v38 }
 0x14f   :  { %1010 = vmatpush2.msra.mxu0 %v927_v50  ;;  %v1082_v50 = vld [vmem:[#allocation10 + $0x170] sm:$0xff]  ;;  %1160 = vmatprep.subr.mxu1 %v1083_v40 }
 0x150   :  { %1011 = vmatprep.subr.mxu0 %v926_v62  ;;  %v1081_v62 = vld [vmem:[#allocation10 + $0x168] sm:$0xff]  ;;  %1161 = vmatpush2.msra.mxu1 %v1082_v50 }
 0x151   :  { %1012 = vmatpush2.msra.mxu0 %v925_v41  ;;  %v1080_v41 = vld [vmem:[#allocation10 + $0x160] sm:$0xff]  ;;  %1162 = vmatprep.subr.mxu1 %v1081_v62 }
 0x152   :  { %1013 = vmatprep.subr.mxu0 %v924_v52  ;;  %v1079_v52 = vld [vmem:[#allocation10 + $0x158] sm:$0xff]  ;;  %1163 = vmatpush2.msra.mxu1 %v1080_v41 }
 0x153   :  { %1014 = vmatpush2.msra.mxu0 %v923_v2  ;;  %v1078_v2 = vld [vmem:[#allocation10 + $0x150] sm:$0xff]  ;;  %1164 = vmatprep.subr.mxu1 %v1079_v52 }
 0x154   :  { %1015 = vmatprep.subr.mxu0 %v922_v43  ;;  %v1077_v43 = vld [vmem:[#allocation10 + $0x148] sm:$0xff]  ;;  %1165 = vmatpush2.msra.mxu1 %v1078_v2 }
 0x155   :  { %1016 = vmatpush2.msra.mxu0 %v921_v53  ;;  %1166 = vmatprep.subr.mxu1 %v1077_v43  ;;  %v581_v53 = vld [vmem:[%s1554_s3] sm:$0x3] }
 0x156   :  { %1017 = vmatprep.subr.mxu0 %v920_v3  ;;  %1167 = vmatpush2.msra.mxu1 %v1076_v7 }
 0x157   :  { %1018 = vmatpush2.msra.mxu0 %v919_v44  ;;  %v586_v44 = vrot.slane %v581_v53, %v1478_v32  ;;  %1168 = vmatprep.subr.mxu1 %v1075_v8 }
 0x158   :  { %1019 = vmatprep.subr.mxu0 %v918_v39  ;;  %v590_v39 = vrot.slane %v581_v53, %v1474_v30  ;;  %1169 = vmatpush2.msra.mxu1 %v1074_v9 }
 0x159   :  { %1020 = vmatpush2.msra.mxu0 %v917_v45  ;;  %1170 = vmatprep.subr.mxu1 %v1073_v10 }
 0x15a   :  { %1021 = vmatprep.subr.mxu0 %v916_v47  ;;  %1171 = vmatpush2.msra.mxu1 %v1072_v11 }
 0x15b   :  { %1022 = vmatpush2.msra.mxu0 %v915_v48  ;;  %1172 = vmatprep.subr.mxu1 %v1071_v12 }
 0x15c   :  { %1173 = vmatpush2.msra.mxu1 %v1070_v13 }
 0x15d   :  { %1174 = vmatprep.subr.mxu1 %v1069_v14 }
 0x15e   :  { %1175 = vmatpush2.msra.mxu1 %v1068_v15 }
 0x19a   :  { %v659_v3 = vpop.f32.mrf.mxu0  ;;  %v730_v45 = vpop.f32.mrf.mxu1 }
 0x19b   :  { %v660_v48 = vadd.f32 %v659_v3, %v586_v44 }
 0x19c   :  { %v661_v47 = vpop.f32.mrf.mxu0  ;;  %v732_v51 = vpop.f32.mrf.mxu1 }
 0x19d   :  { %v662_v49 = vadd.f32 %v661_v47, %v590_v39  ;;  %v731_v54 = vadd.f32 %v730_v45, %v660_v48 }
 0x19f   :  { %v733_v56 = vadd.f32 %v732_v51, %v662_v49 }
 0x1db   :  { %v801_v4 = vpop.f32.mrf.mxu0  ;;  %v872_v55 = vpop.f32.mrf.mxu1 }
 0x1dc   :  { %v802_v57 = vadd.f32 %v801_v4, %v731_v54 }
 0x1dd   :  { %v803_v58 = vpop.f32.mrf.mxu0  ;;  %v874_v59 = vpop.f32.mrf.mxu1 }
 0x1de   :  { %v873_v42 = vadd.f32 %v872_v55, %v802_v57  ;;  %v804_v46 = vadd.f32 %v803_v58, %v733_v56 }
 0x1e0   :  { %v875_v60 = vadd.f32 %v874_v59, %v804_v46  ;;  %v879_v0 = vmul.f32 0.01, %v873_v42  ;;  %vm877_vm1 = vcmp.ge.f32.partialorder %v873_v42, 0.0 }
 0x1e2   :  { %v880_v1 = vmul.f32 0.01, %v875_v60  ;;  %vm878_vm2 = vcmp.ge.f32.partialorder %v875_v60, 0.0  ;;  %v881_v6 = vsel %vm877_vm1, %v873_v42, %v879_v0 }
 0x1e4   :  { %v882_v5 = vsel %vm878_vm2, %v875_v60, %v880_v1 }
 0x1e5   :  { %1023 = vmatprep.mubr.f32.mxu0 %v882_v5 }
 0x1e6   :  { %1024 = vmatmul.mubr.f32.vlgmr.msra.gmra.mxu0 %v881_v6 }
 0x2a6   :  { %v1025_v19 = vpop.f32.mrf.mxu0 }
 0x2a7   :  { %v1026_v20 = vadd.f32 %v1025_v19, %v952_v17 }
 0x2a8   :  { %v1027_v21 = vpop.f32.mrf.mxu0 }
 0x2a9   :  { %v1028_v22 = vadd.f32 %v1027_v21, %v956_v18  ;;  %v1032_v23 = vmul.f32 0.01, %v1026_v20  ;;  %vm1030_vm3 = vcmp.ge.f32.partialorder %v1026_v20, 0.0 }
 0x2ab   :  { %v1033_v24 = vmul.f32 0.01, %v1028_v22  ;;  %vm1031_vm4 = vcmp.ge.f32.partialorder %v1028_v22, 0.0  ;;  %v1034_v26 = vsel %vm1030_vm3, %v1026_v20, %v1032_v23 }
 0x2ad   :  { %v1035_v25 = vsel %vm1031_vm4, %v1028_v22, %v1033_v24 }
 0x2ae   :  { %1176 = vmatprep.mubr.f32.mxu1 %v1035_v25 }
 0x2af   :  { %1177 = vmatmul.mubr.f32.vlgmr.msra.gmra.mxu1 %v1034_v26 }
 0x36f   :  { %v1178_v29 = vpop.f32.mrf.mxu1 }
 0x370   :  { %v1179_v31 = vadd.f32 %v1178_v29, %v1105_v27 }
 0x371   :  { %v1180_v33 = vpop.f32.mrf.mxu1 }
 0x372   :  { %v1183_v34 = vmul.f32 %v1179_v31, %v1179_v31  ;;  %v1181_v63 = vadd.f32 %v1180_v33, %v1109_v28 }
 0x374   :  { %v1184_v35 = vmul.f32 %v1181_v63, %v1181_v63  ;;  %v1185_v36 = vsel %vm106_vm0, %v1183_v34, 0.0 }
 0x376   :  { %v1186_v37 = vsel %vm106_vm0, %v1184_v35, 0.0 }
 0x377   :  { %v1187_v38 = vadd.f32 %v1186_v37, %v1185_v36 }
 0x379   :  { %1188 = vadd.xlane.f32.xlu1 %v1187_v38 }
 0x402   :  { %v1189_v40 = vpop.xlane.xlu1 %1188 }
 0x403   :  { %1234 = vrsqrt.f32 %v1189_v40 }
 0x410   :  { %v1235_v50 = vpop.eup %1234 }
 0x411   :  { %v1191_v32 = vmul.f32 %v1235_v50, %v1179_v31  ;;  %v1192_v62 = vmul.f32 %v1235_v50, %v1181_v63 }
 0x413   :  { %v1195_v30 = vcombine.low %v1191_v32, %v1192_v62 }
 0x415   :  { %1225 = vst.sshfl [vmem:[#allocation11] sm:$0x33 pattern:$0x76325410] %v1195_v30 }
 0x416   :  { %1347 = shalt.err (!%p1344_p1)
}
 0x417   :  { %1214 = dma.vmem_to_hbm [thread:$0]  %s1212_s7, 64, %s1559_s8, [#allocation4]  }
 0x418   :  { %1362 = dma.done.wait [#allocation4], 64  }
 0x419   :  { %1363 = vsyncadd [#allocation4], 4294967232 }
 0x41a   :  { %1218 = vsyncpa [#allocation3], 1 }
 0x41b   :  { %1219 = vsyncpa [#allocation6], 1 }
 0x41c   :  { %1220 = vsyncpa [#allocation9], 1 }
 0x41d   :  { %1221 = vsyncpa [#allocation4], 1 }

</bundles_post_ra>
